<compile_context>
chip_gen: v6e
topology: v6e:2x2x1
jax: 0.10.0
libtpu: 0.0.40
codegen_flags: <defaults>
</compile_context>

<pallas_src>
import functools

import jax
import jax.numpy as jnp
import numpy as np
from jax.experimental import pallas as pl
from jax.experimental.pallas import tpu as pltpu


def rnn_fc_kernel(x_ref,
                  wih0_ref, whh0_ref, b0_ref,
                  w1_ref, b1_ref,
                  wfc_ref, bfc_ref,
                  out_ref, *, window_size):
    """Two-layer Elman RNN (tanh) + final Linear for one row-tile.

    x_ref   : (T*tile_m, F)  time-major rows (rows [t*tile_m:(t+1)*tile_m] = step t)
    wih0    : (F, H)         pre-transposed torch weight_ih_l0      (matmul dtype)
    whh0    : (H, H)         pre-transposed torch weight_hh_l0      (matmul dtype)
    b0      : (1, H)         bias_ih_l0 + bias_hh_l0                (f32)
    w1      : (2H, H)        [weight_ih_l1; weight_hh_l1] pre-transposed & stacked
    b1      : (1, H)         bias_ih_l1 + bias_hh_l1                (f32)
    wfc     : (H, E)         pre-transposed fc.weight
    bfc     : (1, E)         fc.bias                                (f32)
    out_ref : (tile_m, E)
    """
    T = window_size
    tile_m, _ = out_ref.shape
    H = whh0_ref.shape[-1]
    cdt = whh0_ref.dtype                      # MXU-input dtype (f32 or bf16)

    # Hoisted layer-0 input projection: ONE big matmul over all timesteps,
    # bias folded in with a single broadcast add.  f32 accumulation.
    u0 = jnp.dot(x_ref[...], wih0_ref[...],
                 preferred_element_type=jnp.float32) + b0_ref[...]   # (T*tile_m, H)

    whh0 = whh0_ref[...]
    w1 = w1_ref[...]
    wfc = wfc_ref[...]
    # Hoist the b1 broadcast out of the unrolled loop (JAX does not CSE broadcast_in_dim).
    b1 = jnp.broadcast_to(b1_ref[...], (tile_m, H))

    h0 = jnp.zeros((tile_m, H), jnp.float32)
    h1 = jnp.zeros((tile_m, H), jnp.float32)

    # T (window_size) is small and static -> unroll.  Per step only:
    #   layer 0:  h0 = tanh(u0_t + h0 @ Whh0)                 (1 matmul)
    #   layer 1:  h1 = tanh([h0 | h1] @ [Wih1; Whh1] + b1)    (1 fused matmul)
    for t in range(T):
        u0_t = u0[t * tile_m:(t + 1) * tile_m, :]
        h0 = jnp.tanh(u0_t + jnp.dot(h0.astype(cdt), whh0,
                                     preferred_element_type=jnp.float32))
        z = jnp.concatenate([h0, h1], axis=-1).astype(cdt)          # (tile_m, 2H)
        h1 = jnp.tanh(jnp.dot(z, w1, preferred_element_type=jnp.float32) + b1)

    out = jnp.dot(h1.astype(cdt), wfc,
                  preferred_element_type=jnp.float32) + bfc_ref[...]
    out_ref[...] = out.astype(out_ref.dtype)


def lstm_sequential_embedding_forward(x, params, *, embedding_size, hidden_dim,
                                      tile_m=None, matmul_dtype=jnp.float32):
    """Forward pass of LSTMSequentialEmbedding.

    x      : (batch, window_size, N, n_features)  float32
    params : dict of torch-shaped weights (see init_params)
    returns: (batch, N, embedding_size)  float32
    """
    B, T, N, F = x.shape
    H = hidden_dim
    E = embedding_size
    M = B * N
    if tile_m is None:
        tile_m = M                      # whole problem in one grid step by default
    assert M % tile_m == 0 and tile_m % 8 == 0
    n_tiles = M // tile_m

    # Layout glue mirroring the torch forward:
    #   (B,T,N,F) -> permute(0,2,1,3) -> (B*N, T, F)
    # plus: go time-major and pre-block over rows so each grid step gets one contiguous
    # 2D (T*tile_m, F) slab (rows [t*tile_m:(t+1)*tile_m] of the slab == timestep t).
    x_tm = jnp.transpose(x, (1, 0, 2, 3)).reshape(T, M, F)          # (T, M, F)
    x_blk = (x_tm.reshape(T, n_tiles, tile_m, F)
                 .transpose(1, 0, 2, 3)
                 .reshape(n_tiles, T * tile_m, F)
                 .astype(matmul_dtype))

    # Pre-transpose weights for (rows x features) matmuls; fold / stack where possible.
    wih0 = params["weight_ih_l0"].T.astype(matmul_dtype)                     # (F, H)
    whh0 = params["weight_hh_l0"].T.astype(matmul_dtype)                     # (H, H)
    b0 = (params["bias_ih_l0"] + params["bias_hh_l0"]).reshape(1, H).astype(jnp.float32)
    w1 = jnp.concatenate([params["weight_ih_l1"].T,
                          params["weight_hh_l1"].T], axis=0).astype(matmul_dtype)  # (2H, H)
    b1 = (params["bias_ih_l1"] + params["bias_hh_l1"]).reshape(1, H).astype(jnp.float32)
    wfc = params["fc_weight"].T.astype(matmul_dtype)                         # (H, E)
    bfc = params["fc_bias"].reshape(1, E).astype(jnp.float32)

    full = lambda *shape: pl.BlockSpec(shape, lambda i: (0,) * len(shape))

    kernel = functools.partial(rnn_fc_kernel, window_size=T)

    out = pl.pallas_call(
        kernel,
        out_shape=jax.ShapeDtypeStruct((M, E), jnp.float32),
        grid=(n_tiles,),
        in_specs=[
            # x: leading tile dim squeezed -> kernel sees a 2D (T*tile_m, F) slab
            pl.BlockSpec((None, T * tile_m, F), lambda i: (i, 0, 0)),
            full(F, H), full(H, H), full(1, H),        # layer 0
            full(2 * H, H), full(1, H),                # layer 1 (fused weight)
            full(H, E), full(1, E),                    # fc
        ],
        out_specs=pl.BlockSpec((tile_m, E), lambda i: (i, 0)),
        compiler_params=pltpu.CompilerParams(
            dimension_semantics=("parallel",)),
    )(x_blk, wih0, whh0, b0, w1, b1, wfc, bfc)

    return out.reshape(B, N, E)


def init_params(key, *, n_features, hidden_dim, embedding_size):
    """Deterministic init mimicking torch's U(-1/sqrt(H), 1/sqrt(H)) for RNN & Linear."""
    H, F, E = hidden_dim, n_features, embedding_size
    bound = 1.0 / np.sqrt(H)
    keys = jax.random.split(key, 10)
    u = lambda k, shape: jax.random.uniform(k, shape, jnp.float32, -bound, bound)
    return {
        "weight_ih_l0": u(keys[0], (H, F)),
        "weight_hh_l0": u(keys[1], (H, H)),
        "bias_ih_l0":   u(keys[2], (H,)),
        "bias_hh_l0":   u(keys[3], (H,)),
        "weight_ih_l1": u(keys[4], (H, H)),
        "weight_hh_l1": u(keys[5], (H, H)),
        "bias_ih_l1":   u(keys[6], (H,)),
        "bias_hh_l1":   u(keys[7], (H,)),
        "fc_weight":    u(keys[8], (E, H)),
        "fc_bias":      u(keys[9], (E,)),
    }


def reference_forward(x, params, *, embedding_size, hidden_dim):
    """Pure-JAX reference matching torch.nn.RNN(num_layers=2, tanh) + Linear."""
    B, T, N, F = x.shape
    H, E = hidden_dim, embedding_size
    M = B * N
    seq = jnp.transpose(x, (0, 2, 1, 3)).reshape(M, T, F).astype(jnp.float32)

    def run_layer(inp, wih, whh, bih, bhh):
        def step(h, xt):
            h = jnp.tanh(xt @ wih.T + bih + h @ whh.T + bhh)
            return h, h
        h0 = jnp.zeros((M, H), jnp.float32)
        _, outs = jax.lax.scan(step, h0, jnp.swapaxes(inp, 0, 1))
        return jnp.swapaxes(outs, 0, 1)

    h = run_layer(seq, params["weight_ih_l0"], params["weight_hh_l0"],
                  params["bias_ih_l0"], params["bias_hh_l0"])
    h = run_layer(h, params["weight_ih_l1"], params["weight_hh_l1"],
                  params["bias_ih_l1"], params["bias_hh_l1"])
    last = h[:, -1, :]
    out = last @ params["fc_weight"].T + params["fc_bias"]
    return out.reshape(B, N, E)


if __name__ == "__main__":
    # Module config: input_shape = (window_size, N, n_features)
    batch_size = 2
    window_size = 8
    N = 16
    n_features = 4
    hidden_dim = 32
    embedding_size = 16
    # lstm_layers = 2 (fixed; see note at top)

    key = jax.random.PRNGKey(0)
    k_x, k_p = jax.random.split(key)
    x = jax.random.normal(k_x, (batch_size, window_size, N, n_features), jnp.float32)
    params = init_params(k_p, n_features=n_features, hidden_dim=hidden_dim,
                         embedding_size=embedding_size)

    ref = reference_forward(x, params, embedding_size=embedding_size, hidden_dim=hidden_dim)

    # 1) f32 MXU inputs, single grid step (default tile_m = M): exact-path check.
    out = lstm_sequential_embedding_forward(
        x, params, embedding_size=embedding_size, hidden_dim=hidden_dim)
    out = jax.block_until_ready(out)
    assert out.shape == (batch_size, N, embedding_size)
    np.testing.assert_allclose(np.asarray(out), np.asarray(ref), rtol=1e-4, atol=1e-4)

    # 2) Multi-tile grid (e.g. 2 TensorCores on v7x): tile_m = M // 2, still exact f32 path.
    out_2 = lstm_sequential_embedding_forward(
        x, params, embedding_size=embedding_size, hidden_dim=hidden_dim,
        tile_m=(batch_size * N) // 2)
    out_2 = jax.block_until_ready(out_2)
    np.testing.assert_allclose(np.asarray(out_2), np.asarray(ref), rtol=1e-4, atol=1e-4)

    # 3) bf16 MXU-input fast path (f32 accumulation / tanh / state) - looser tolerance.
    out_bf16 = lstm_sequential_embedding_forward(
        x, params, embedding_size=embedding_size, hidden_dim=hidden_dim,
        matmul_dtype=jnp.bfloat16)
    out_bf16 = jax.block_until_ready(out_bf16)
    np.testing.assert_allclose(np.asarray(out_bf16), np.asarray(ref), rtol=5e-2, atol=5e-2)

    print("KERNEL_OK")
</pallas_src>

<mosaic_0001>
module attributes {stable_mosaic.version = 11 : i64} {
  func.func @rnn_fc_kernel(%arg0: i32, %arg1: memref<1x256x4xf32, #tpu.memory_space<vmem>>, %arg2: memref<4x32xf32, #tpu.memory_space<vmem>>, %arg3: memref<32x32xf32, #tpu.memory_space<vmem>>, %arg4: memref<1x32xf32, #tpu.memory_space<vmem>>, %arg5: memref<64x32xf32, #tpu.memory_space<vmem>>, %arg6: memref<1x32xf32, #tpu.memory_space<vmem>>, %arg7: memref<32x16xf32, #tpu.memory_space<vmem>>, %arg8: memref<1x16xf32, #tpu.memory_space<vmem>>, %arg9: memref<32x16xf32, #tpu.memory_space<vmem>>) attributes {dimension_semantics = [#tpu.dimension_semantics<parallel>], iteration_bounds = array<i64: 1>, scalar_prefetch = 0 : i64, scratch_operands = 0 : i64, tpu.core_type = #tpu.core_type<tc>, window_params = [{transform_indices = @transform_0, window_bounds = array<i64: 1, 256, 4>}, {pipeline_mode = #tpu.pipeline_mode<synchronous>, transform_indices = @transform_1, window_bounds = array<i64: 4, 32>}, {pipeline_mode = #tpu.pipeline_mode<synchronous>, transform_indices = @transform_2, window_bounds = array<i64: 32, 32>}, {pipeline_mode = #tpu.pipeline_mode<synchronous>, transform_indices = @transform_3, window_bounds = array<i64: 1, 32>}, {pipeline_mode = #tpu.pipeline_mode<synchronous>, transform_indices = @transform_4, window_bounds = array<i64: 64, 32>}, {pipeline_mode = #tpu.pipeline_mode<synchronous>, transform_indices = @transform_5, window_bounds = array<i64: 1, 32>}, {pipeline_mode = #tpu.pipeline_mode<synchronous>, transform_indices = @transform_6, window_bounds = array<i64: 32, 16>}, {pipeline_mode = #tpu.pipeline_mode<synchronous>, transform_indices = @transform_7, window_bounds = array<i64: 1, 16>}, {transform_indices = @transform_8, window_bounds = array<i64: 32, 16>}]} {
    %c0 = arith.constant 0 : index
    %c0_0 = arith.constant 0 : index
    %c0_1 = arith.constant 0 : index
    %0 = vector.load %arg1[%c0, %c0_0, %c0_1] : memref<1x256x4xf32, #tpu.memory_space<vmem>>, vector<1x256x4xf32>
    %1 = vector.shape_cast %0 : vector<1x256x4xf32> to vector<256x4xf32>
    %c0_2 = arith.constant 0 : index
    %c0_3 = arith.constant 0 : index
    %2 = vector.load %arg2[%c0_2, %c0_3] : memref<4x32xf32, #tpu.memory_space<vmem>>, vector<4x32xf32>
    %cst = arith.constant dense<0.000000e+00> : vector<256x32xf32>
    %3 = tpu.matmul %1, %2, %cst {dimension_numbers = #tpu.dot_dimension_numbers<[1], [0], [0], [1], [0, 0, 1, 1], [], []>} : vector<256x4xf32>, vector<4x32xf32>, vector<256x32xf32> -> vector<256x32xf32>
    %c0_4 = arith.constant 0 : index
    %c0_5 = arith.constant 0 : index
    %4 = vector.load %arg4[%c0_4, %c0_5] : memref<1x32xf32, #tpu.memory_space<vmem>>, vector<1x32xf32>
    %5 = vector.broadcast %4 : vector<1x32xf32> to vector<256x32xf32>
    %6 = arith.addf %3, %5 : vector<256x32xf32>
    %c0_6 = arith.constant 0 : index
    %c0_7 = arith.constant 0 : index
    %7 = vector.load %arg3[%c0_6, %c0_7] : memref<32x32xf32, #tpu.memory_space<vmem>>, vector<32x32xf32>
    %c0_8 = arith.constant 0 : index
    %c0_9 = arith.constant 0 : index
    %8 = vector.load %arg5[%c0_8, %c0_9] : memref<64x32xf32, #tpu.memory_space<vmem>>, vector<64x32xf32>
    %c0_10 = arith.constant 0 : index
    %c0_11 = arith.constant 0 : index
    %9 = vector.load %arg7[%c0_10, %c0_11] : memref<32x16xf32, #tpu.memory_space<vmem>>, vector<32x16xf32>
    %c0_12 = arith.constant 0 : index
    %c0_13 = arith.constant 0 : index
    %10 = vector.load %arg6[%c0_12, %c0_13] : memref<1x32xf32, #tpu.memory_space<vmem>>, vector<1x32xf32>
    %11 = vector.shape_cast %10 : vector<1x32xf32> to vector<1x32xf32>
    %12 = vector.broadcast %11 : vector<1x32xf32> to vector<32x32xf32>
    %cst_14 = arith.constant 0.000000e+00 : f32
    %13 = vector.broadcast %cst_14 : f32 to vector<32x32xf32>
    %cst_15 = arith.constant 0.000000e+00 : f32
    %14 = vector.broadcast %cst_15 : f32 to vector<32x32xf32>
    %15 = vector.extract_strided_slice %6 {offsets = [0, 0], sizes = [32, 32], strides = [1, 1]} : vector<256x32xf32> to vector<32x32xf32>
    %cst_16 = arith.constant dense<0.000000e+00> : vector<32x32xf32>
    %16 = tpu.matmul %13, %7, %cst_16 {dimension_numbers = #tpu.dot_dimension_numbers<[1], [0], [0], [1], [0, 0, 1, 1], [], []>} : vector<32x32xf32>, vector<32x32xf32>, vector<32x32xf32> -> vector<32x32xf32>
    %17 = arith.addf %15, %16 : vector<32x32xf32>
    %18 = math.tanh %17 : vector<32x32xf32>
    %19 = tpu.concatenate %18, %14 in 1 : vector<32x32xf32>, vector<32x32xf32> -> vector<32x64xf32>
    %cst_17 = arith.constant dense<0.000000e+00> : vector<32x32xf32>
    %20 = tpu.matmul %19, %8, %cst_17 {dimension_numbers = #tpu.dot_dimension_numbers<[1], [0], [0], [1], [0, 0, 1, 1], [], []>} : vector<32x64xf32>, vector<64x32xf32>, vector<32x32xf32> -> vector<32x32xf32>
    %21 = arith.addf %20, %12 : vector<32x32xf32>
    %22 = math.tanh %21 : vector<32x32xf32>
    %23 = vector.extract_strided_slice %6 {offsets = [32, 0], sizes = [32, 32], strides = [1, 1]} : vector<256x32xf32> to vector<32x32xf32>
    %cst_18 = arith.constant dense<0.000000e+00> : vector<32x32xf32>
    %24 = tpu.matmul %18, %7, %cst_18 {dimension_numbers = #tpu.dot_dimension_numbers<[1], [0], [0], [1], [0, 0, 1, 1], [], []>} : vector<32x32xf32>, vector<32x32xf32>, vector<32x32xf32> -> vector<32x32xf32>
    %25 = arith.addf %23, %24 : vector<32x32xf32>
    %26 = math.tanh %25 : vector<32x32xf32>
    %27 = tpu.concatenate %26, %22 in 1 : vector<32x32xf32>, vector<32x32xf32> -> vector<32x64xf32>
    %cst_19 = arith.constant dense<0.000000e+00> : vector<32x32xf32>
    %28 = tpu.matmul %27, %8, %cst_19 {dimension_numbers = #tpu.dot_dimension_numbers<[1], [0], [0], [1], [0, 0, 1, 1], [], []>} : vector<32x64xf32>, vector<64x32xf32>, vector<32x32xf32> -> vector<32x32xf32>
    %29 = arith.addf %28, %12 : vector<32x32xf32>
    %30 = math.tanh %29 : vector<32x32xf32>
    %31 = vector.extract_strided_slice %6 {offsets = [64, 0], sizes = [32, 32], strides = [1, 1]} : vector<256x32xf32> to vector<32x32xf32>
    %cst_20 = arith.constant dense<0.000000e+00> : vector<32x32xf32>
    %32 = tpu.matmul %26, %7, %cst_20 {dimension_numbers = #tpu.dot_dimension_numbers<[1], [0], [0], [1], [0, 0, 1, 1], [], []>} : vector<32x32xf32>, vector<32x32xf32>, vector<32x32xf32> -> vector<32x32xf32>
    %33 = arith.addf %31, %32 : vector<32x32xf32>
    %34 = math.tanh %33 : vector<32x32xf32>
    %35 = tpu.concatenate %34, %30 in 1 : vector<32x32xf32>, vector<32x32xf32> -> vector<32x64xf32>
    %cst_21 = arith.constant dense<0.000000e+00> : vector<32x32xf32>
    %36 = tpu.matmul %35, %8, %cst_21 {dimension_numbers = #tpu.dot_dimension_numbers<[1], [0], [0], [1], [0, 0, 1, 1], [], []>} : vector<32x64xf32>, vector<64x32xf32>, vector<32x32xf32> -> vector<32x32xf32>
    %37 = arith.addf %36, %12 : vector<32x32xf32>
    %38 = math.tanh %37 : vector<32x32xf32>
    %39 = vector.extract_strided_slice %6 {offsets = [96, 0], sizes = [32, 32], strides = [1, 1]} : vector<256x32xf32> to vector<32x32xf32>
    %cst_22 = arith.constant dense<0.000000e+00> : vector<32x32xf32>
    %40 = tpu.matmul %34, %7, %cst_22 {dimension_numbers = #tpu.dot_dimension_numbers<[1], [0], [0], [1], [0, 0, 1, 1], [], []>} : vector<32x32xf32>, vector<32x32xf32>, vector<32x32xf32> -> vector<32x32xf32>
    %41 = arith.addf %39, %40 : vector<32x32xf32>
    %42 = math.tanh %41 : vector<32x32xf32>
    %43 = tpu.concatenate %42, %38 in 1 : vector<32x32xf32>, vector<32x32xf32> -> vector<32x64xf32>
    %cst_23 = arith.constant dense<0.000000e+00> : vector<32x32xf32>
    %44 = tpu.matmul %43, %8, %cst_23 {dimension_numbers = #tpu.dot_dimension_numbers<[1], [0], [0], [1], [0, 0, 1, 1], [], []>} : vector<32x64xf32>, vector<64x32xf32>, vector<32x32xf32> -> vector<32x32xf32>
    %45 = arith.addf %44, %12 : vector<32x32xf32>
    %46 = math.tanh %45 : vector<32x32xf32>
    %47 = vector.extract_strided_slice %6 {offsets = [128, 0], sizes = [32, 32], strides = [1, 1]} : vector<256x32xf32> to vector<32x32xf32>
    %cst_24 = arith.constant dense<0.000000e+00> : vector<32x32xf32>
    %48 = tpu.matmul %42, %7, %cst_24 {dimension_numbers = #tpu.dot_dimension_numbers<[1], [0], [0], [1], [0, 0, 1, 1], [], []>} : vector<32x32xf32>, vector<32x32xf32>, vector<32x32xf32> -> vector<32x32xf32>
    %49 = arith.addf %47, %48 : vector<32x32xf32>
    %50 = math.tanh %49 : vector<32x32xf32>
    %51 = tpu.concatenate %50, %46 in 1 : vector<32x32xf32>, vector<32x32xf32> -> vector<32x64xf32>
    %cst_25 = arith.constant dense<0.000000e+00> : vector<32x32xf32>
    %52 = tpu.matmul %51, %8, %cst_25 {dimension_numbers = #tpu.dot_dimension_numbers<[1], [0], [0], [1], [0, 0, 1, 1], [], []>} : vector<32x64xf32>, vector<64x32xf32>, vector<32x32xf32> -> vector<32x32xf32>
    %53 = arith.addf %52, %12 : vector<32x32xf32>
    %54 = math.tanh %53 : vector<32x32xf32>
    %55 = vector.extract_strided_slice %6 {offsets = [160, 0], sizes = [32, 32], strides = [1, 1]} : vector<256x32xf32> to vector<32x32xf32>
    %cst_26 = arith.constant dense<0.000000e+00> : vector<32x32xf32>
    %56 = tpu.matmul %50, %7, %cst_26 {dimension_numbers = #tpu.dot_dimension_numbers<[1], [0], [0], [1], [0, 0, 1, 1], [], []>} : vector<32x32xf32>, vector<32x32xf32>, vector<32x32xf32> -> vector<32x32xf32>
    %57 = arith.addf %55, %56 : vector<32x32xf32>
    %58 = math.tanh %57 : vector<32x32xf32>
    %59 = tpu.concatenate %58, %54 in 1 : vector<32x32xf32>, vector<32x32xf32> -> vector<32x64xf32>
    %cst_27 = arith.constant dense<0.000000e+00> : vector<32x32xf32>
    %60 = tpu.matmul %59, %8, %cst_27 {dimension_numbers = #tpu.dot_dimension_numbers<[1], [0], [0], [1], [0, 0, 1, 1], [], []>} : vector<32x64xf32>, vector<64x32xf32>, vector<32x32xf32> -> vector<32x32xf32>
    %61 = arith.addf %60, %12 : vector<32x32xf32>
    %62 = math.tanh %61 : vector<32x32xf32>
    %63 = vector.extract_strided_slice %6 {offsets = [192, 0], sizes = [32, 32], strides = [1, 1]} : vector<256x32xf32> to vector<32x32xf32>
    %cst_28 = arith.constant dense<0.000000e+00> : vector<32x32xf32>
    %64 = tpu.matmul %58, %7, %cst_28 {dimension_numbers = #tpu.dot_dimension_numbers<[1], [0], [0], [1], [0, 0, 1, 1], [], []>} : vector<32x32xf32>, vector<32x32xf32>, vector<32x32xf32> -> vector<32x32xf32>
    %65 = arith.addf %63, %64 : vector<32x32xf32>
    %66 = math.tanh %65 : vector<32x32xf32>
    %67 = tpu.concatenate %66, %62 in 1 : vector<32x32xf32>, vector<32x32xf32> -> vector<32x64xf32>
    %cst_29 = arith.constant dense<0.000000e+00> : vector<32x32xf32>
    %68 = tpu.matmul %67, %8, %cst_29 {dimension_numbers = #tpu.dot_dimension_numbers<[1], [0], [0], [1], [0, 0, 1, 1], [], []>} : vector<32x64xf32>, vector<64x32xf32>, vector<32x32xf32> -> vector<32x32xf32>
    %69 = arith.addf %68, %12 : vector<32x32xf32>
    %70 = math.tanh %69 : vector<32x32xf32>
    %71 = vector.extract_strided_slice %6 {offsets = [224, 0], sizes = [32, 32], strides = [1, 1]} : vector<256x32xf32> to vector<32x32xf32>
    %cst_30 = arith.constant dense<0.000000e+00> : vector<32x32xf32>
    %72 = tpu.matmul %66, %7, %cst_30 {dimension_numbers = #tpu.dot_dimension_numbers<[1], [0], [0], [1], [0, 0, 1, 1], [], []>} : vector<32x32xf32>, vector<32x32xf32>, vector<32x32xf32> -> vector<32x32xf32>
    %73 = arith.addf %71, %72 : vector<32x32xf32>
    %74 = math.tanh %73 : vector<32x32xf32>
    %75 = tpu.concatenate %74, %70 in 1 : vector<32x32xf32>, vector<32x32xf32> -> vector<32x64xf32>
    %cst_31 = arith.constant dense<0.000000e+00> : vector<32x32xf32>
    %76 = tpu.matmul %75, %8, %cst_31 {dimension_numbers = #tpu.dot_dimension_numbers<[1], [0], [0], [1], [0, 0, 1, 1], [], []>} : vector<32x64xf32>, vector<64x32xf32>, vector<32x32xf32> -> vector<32x32xf32>
    %77 = arith.addf %76, %12 : vector<32x32xf32>
    %78 = math.tanh %77 : vector<32x32xf32>
    %cst_32 = arith.constant dense<0.000000e+00> : vector<32x16xf32>
    %79 = tpu.matmul %78, %9, %cst_32 {dimension_numbers = #tpu.dot_dimension_numbers<[1], [0], [0], [1], [0, 0, 1, 1], [], []>} : vector<32x32xf32>, vector<32x16xf32>, vector<32x16xf32> -> vector<32x16xf32>
    %c0_33 = arith.constant 0 : index
    %c0_34 = arith.constant 0 : index
    %80 = vector.load %arg8[%c0_33, %c0_34] : memref<1x16xf32, #tpu.memory_space<vmem>>, vector<1x16xf32>
    %81 = vector.broadcast %80 : vector<1x16xf32> to vector<32x16xf32>
    %82 = arith.addf %79, %81 : vector<32x16xf32>
    %c0_35 = arith.constant 0 : index
    %c0_36 = arith.constant 0 : index
    %83 = vector.load %arg9[%c0_35, %c0_36] : memref<32x16xf32, #tpu.memory_space<vmem>>, vector<32x16xf32>
    tpu.vector_store %arg9[%c0_35, %c0_36], %82 {strides = array<i32>} : memref<32x16xf32, #tpu.memory_space<vmem>>, vector<32x16xf32>,
    return
  }
  func.func @transform_0(%arg0: i32) -> (i32, i32, i32) {
    %c0_i32 = arith.constant 0 : i32
    %c0_i32_0 = arith.constant 0 : i32
    %c0_i32_1 = arith.constant 0 : i32
    return %arg0, %c0_i32, %c0_i32_0 : i32, i32, i32
  }
  func.func @transform_1(%arg0: i32) -> (i32, i32) {
    %c0_i32 = arith.constant 0 : i32
    %c0_i32_0 = arith.constant 0 : i32
    %c0_i32_1 = arith.constant 0 : i32
    return %c0_i32, %c0_i32_0 : i32, i32
  }
  func.func @transform_2(%arg0: i32) -> (i32, i32) {
    %c0_i32 = arith.constant 0 : i32
    %c0_i32_0 = arith.constant 0 : i32
    %c0_i32_1 = arith.constant 0 : i32
    return %c0_i32, %c0_i32_0 : i32, i32
  }
  func.func @transform_3(%arg0: i32) -> (i32, i32) {
    %c0_i32 = arith.constant 0 : i32
    %c0_i32_0 = arith.constant 0 : i32
    %c0_i32_1 = arith.constant 0 : i32
    return %c0_i32, %c0_i32_0 : i32, i32
  }
  func.func @transform_4(%arg0: i32) -> (i32, i32) {
    %c0_i32 = arith.constant 0 : i32
    %c0_i32_0 = arith.constant 0 : i32
    %c0_i32_1 = arith.constant 0 : i32
    return %c0_i32, %c0_i32_0 : i32, i32
  }
  func.func @transform_5(%arg0: i32) -> (i32, i32) {
    %c0_i32 = arith.constant 0 : i32
    %c0_i32_0 = arith.constant 0 : i32
    %c0_i32_1 = arith.constant 0 : i32
    return %c0_i32, %c0_i32_0 : i32, i32
  }
  func.func @transform_6(%arg0: i32) -> (i32, i32) {
    %c0_i32 = arith.constant 0 : i32
    %c0_i32_0 = arith.constant 0 : i32
    %c0_i32_1 = arith.constant 0 : i32
    return %c0_i32, %c0_i32_0 : i32, i32
  }
  func.func @transform_7(%arg0: i32) -> (i32, i32) {
    %c0_i32 = arith.constant 0 : i32
    %c0_i32_0 = arith.constant 0 : i32
    %c0_i32_1 = arith.constant 0 : i32
    return %c0_i32, %c0_i32_0 : i32, i32
  }
  func.func @transform_8(%arg0: i32) -> (i32, i32) {
    %c0_i32 = arith.constant 0 : i32
    %c0_i32_0 = arith.constant 0 : i32
    return %arg0, %c0_i32 : i32, i32
  }
}

</mosaic_0001>

<bundles_post_ra>
// kernel: tpu_custom_call.1
= control target key start
LH: loop header
LB: loop body
LE: loop exit
PB: predicated region body
PF: predicated region fallthrough
CT: control target
= control target key end

     0   :  { %vm166_vm0 = vcmask 1043456   ;;  %vm69_vm1 = vcmask 31744   ;;  %v3113_v3 = vmov 0.0   ;;  %vm418_vm2 = vcmask 261120   ;;  %s3114_s9 = smov 32   ;;  %s3922_s2 = inlined_call_operand.vmem [shape: f32[32,32], index: 2, kind: input, shape index: {}]   ;;  %s3923_s1 = inlined_call_operand.vmem [shape: f32[4,32], index: 1, kind: input, shape index: {}]   ;;  %s3924_s0 = inlined_call_operand.vmem [shape: f32[1,256,4], index: 0, kind: input, shape index: {}]   ;;  %s3925_s4 = inlined_call_operand.vmem [shape: f32[64,32], index: 4, kind: input, shape index: {}]   ;;  %s3926_s3 = inlined_call_operand.vmem [shape: f32[1,32], index: 3, kind: input, shape index: {}]   ;;  %s3927_s5 = inlined_call_operand.vmem [shape: f32[1,32], index: 5, kind: input, shape index: {}]   ;;  %s3928_s6 = inlined_call_operand.vmem [shape: f32[32,16], index: 6, kind: input, shape index: {}]   ;;  %s3929_s7 = inlined_call_operand.vmem [shape: f32[1,16], index: 7, kind: input, shape index: {}]   ;;  %s3930_s8 = inlined_call_operand.vmem [shape: f32[32,16], index: 8, kind: output, shape index: {}]  }
   0x1   :  { %v3163_v0 = vld [vmem:[%s3922_s2 + $0x18] sm:$0xff]  ;;  %v61_v1 = vld [vmem:[%s3923_s1] sm:$0xf]  ;;  %v3171_v2 = vld [vmem:[%s3922_s2 + $0x10] sm:$0xff]  ;;  %2675 = vmatprep.mubr.f32.mxu1 %v3113_v3  ;;  %vm519_vm3 = vcmask 523264   ;;  %vm2307_vm4 = vcmask 130048  }
   0x2   :  { %2667 = vmatprep.subr.mxu1 %v3163_v0  ;;  %2617 = vmatprep.subr.msk.mxu0 %vm166_vm0, %v61_v1  ;;  %v29_v4 = vld [vmem:[%s3924_s0] sm:$0xff]  ;;  %v30_v5 = vld [vmem:[%s3924_s0 + $0x8] sm:$0xff]  ;;  %v31_v7 = vld [vmem:[%s3924_s0 + $0x10] sm:$0xff] }
   0x3   :  { %2668 = vmatpush3.msra.mxu1 %v3163_v0  ;;  %2618 = vmatpush3.msk.msra.mxu0 %vm166_vm0, %v61_v1  ;;  %v3184_v6 = vld [vmem:[%s3922_s2 + $0x8] sm:$0xff]  ;;  %v3196_v8 = vld [vmem:[%s3922_s2] sm:$0xff]  ;;  %v32_v9 = vld [vmem:[%s3924_s0 + $0x18] sm:$0xff] }
   0x4   :  { %2669 = vmatprep.subr.mxu1 %v3171_v2  ;;  %2619 = vmatprep.mubr.msk.f32.mxu0 %vm69_vm1, %v29_v4  ;;  %v3210_v10 = vld [vmem:[%s3925_s4 + $0x38] sm:$0xff]  ;;  %v3218_v11 = vld [vmem:[%s3925_s4 + $0x30] sm:$0xff]  ;;  %v3227_v12 = vld [vmem:[%s3925_s4 + $0x28] sm:$0xff] }
   0x5   :  { %2670 = vmatpush3.msra.mxu1 %v3171_v2  ;;  %2620 = vmatmul.mubr.msk.f32.vlgmr.msra.gmra.mxu0 %vm69_vm1, %v30_v5  ;;  %v3234_v13 = vld [vmem:[%s3925_s4 + $0x20] sm:$0xff]  ;;  %v3241_v14 = vld [vmem:[%s3925_s4 + $0x18] sm:$0xff]  ;;  %v3250_v15 = vld [vmem:[%s3925_s4 + $0x10] sm:$0xff] }
   0x6   :  { %2671 = vmatprep.subr.mxu1 %v3184_v6  ;;  %2622 = vmatprep.mubr.msk.f32.mxu0 %vm69_vm1, %v31_v7  ;;  %v3259_v16 = vld [vmem:[%s3925_s4 + $0x8] sm:$0xff]  ;;  %v3268_v17 = vld [vmem:[%s3925_s4] sm:$0xff]  ;;  %v35_v20 = vld [vmem:[%s3924_s0 + $0x30] sm:$0xff] }
   0x7   :  { %2672 = vmatpush3.msra.mxu1 %v3184_v6  ;;  %2753 = vmatprep.subr.mxu0 %v3210_v10  ;;  %v33_v18 = vld [vmem:[%s3924_s0 + $0x20] sm:$0xff]  ;;  %v34_v19 = vld [vmem:[%s3924_s0 + $0x28] sm:$0xff]  ;;  %v36_v21 = vld [vmem:[%s3924_s0 + $0x38] sm:$0xff] }
   0x8   :  { %2673 = vmatprep.subr.mxu1 %v3196_v8  ;;  %2754 = vmatpush3.msra.mxu0 %v3210_v10  ;;  %v3300_v22 = vld [vmem:[%s3926_s3] ss:$0 sm:$0xff]  ;;  %v38_v57 = vld [vmem:[%s3924_s0 + $0x48] sm:$0xff]  ;;  %v39_v59 = vld [vmem:[%s3924_s0 + $0x50] sm:$0xff] }
   0x9   :  { %2674 = vmatpush3.msra.mxu1 %v3196_v8  ;;  %2623 = vmatmul.mubr.msk.f32.gmra.mxu0 %vm69_vm1, %v32_v9  ;;  %v3345_v48 = vld [vmem:[%s3927_s5] ss:$0 sm:$0xff]  ;;  %v40_v60 = vld [vmem:[%s3924_s0 + $0x58] sm:$0xff] }
   0xa   :  { %2676 = vmatmul.mubr.f32.vlgmr.msra.gmra.mxu1 %v3113_v3  ;;  %2681 = vmatprep.subr.mxu1 %v3210_v10  ;;  %v37_v56 = vld [vmem:[%s3924_s0 + $0x40] sm:$0xff] }
   0xb   :  { %2678 = vmatprep.mubr.f32.mxu1 %v3113_v3  ;;  %2682 = vmatpush3.msra.mxu1 %v3210_v10 }
   0xc   :  { %2683 = vmatprep.subr.mxu1 %v3218_v11  ;;  %2755 = vmatprep.subr.mxu0 %v3218_v11 }
   0xd   :  { %2684 = vmatpush3.msra.mxu1 %v3218_v11  ;;  %2756 = vmatpush3.msra.mxu0 %v3218_v11 }
   0xe   :  { %2679 = vmatmul.mubr.f32.gmra.mxu1 %v3113_v3  ;;  %2685 = vmatprep.subr.mxu1 %v3227_v12 }
   0xf   :  { %2757 = vmatprep.subr.mxu0 %v3227_v12  ;;  %2686 = vmatpush3.msra.mxu1 %v3227_v12 }
  0x10   :  { %2758 = vmatpush3.msra.mxu0 %v3227_v12  ;;  %2687 = vmatprep.subr.mxu1 %v3234_v13 }
  0x11   :  { %2759 = vmatprep.subr.mxu0 %v3234_v13  ;;  %2688 = vmatpush3.msra.mxu1 %v3234_v13 }
  0x12   :  { %2760 = vmatpush3.msra.mxu0 %v3234_v13  ;;  %2689 = vmatprep.subr.mxu1 %v3241_v14 }
  0x13   :  { %2761 = vmatprep.subr.mxu0 %v3241_v14  ;;  %2690 = vmatpush3.msra.mxu1 %v3241_v14 }
  0x14   :  { %2762 = vmatpush3.msra.mxu0 %v3241_v14  ;;  %2691 = vmatprep.subr.mxu1 %v3250_v15 }
  0x15   :  { %2763 = vmatprep.subr.mxu0 %v3250_v15  ;;  %2692 = vmatpush3.msra.mxu1 %v3250_v15 }
  0x16   :  { %2764 = vmatpush3.msra.mxu0 %v3250_v15  ;;  %2693 = vmatprep.subr.mxu1 %v3259_v16 }
  0x17   :  { %2765 = vmatprep.subr.mxu0 %v3259_v16  ;;  %2694 = vmatpush3.msra.mxu1 %v3259_v16 }
  0x18   :  { %2766 = vmatpush3.msra.mxu0 %v3259_v16  ;;  %2695 = vmatprep.subr.mxu1 %v3268_v17 }
  0x19   :  { %2767 = vmatprep.subr.mxu0 %v3268_v17  ;;  %2696 = vmatpush3.msra.mxu1 %v3268_v17 }
  0x1a   :  { %2768 = vmatpush3.msra.mxu0 %v3268_v17  ;;  %2703 = vmatprep.subr.mxu1 %v3163_v0 }
  0x1b   :  { %2811 = vmatprep.subr.mxu0 %v3163_v0  ;;  %2625 = vmatprep.mubr.msk.f32.mxu0 %vm69_vm1, %v33_v18 }
  0x1c   :  { %2626 = vmatmul.mubr.msk.f32.gmra.mxu0 %vm69_vm1, %v34_v19 }
  0x1d   :  { %2628 = vmatprep.mubr.msk.f32.mxu0 %vm69_vm1, %v35_v20 }
  0x20   :  { %2629 = vmatmul.mubr.msk.f32.gmra.mxu0 %vm69_vm1, %v36_v21 }
  0x21   :  { %2631 = vmatprep.mubr.msk.f32.mxu0 %vm69_vm1, %v37_v56  ;;  %v55_v56 = vld [vmem:[%s3924_s0 + $0xd0] sm:$0xff] }
  0x24   :  { %2632 = vmatmul.mubr.msk.f32.gmra.mxu0 %vm69_vm1, %v38_v57  ;;  %v56_v57 = vld [vmem:[%s3924_s0 + $0xd8] sm:$0xff] }
  0x25   :  { %2634 = vmatprep.mubr.msk.f32.mxu0 %vm69_vm1, %v39_v59  ;;  %v58_v59 = vld [vmem:[%s3924_s0 + $0xe8] sm:$0xff] }
  0x28   :  { %2635 = vmatmul.mubr.msk.f32.gmra.mxu0 %vm69_vm1, %v40_v60  ;;  %v59_v60 = vld [vmem:[%s3924_s0 + $0xf0] sm:$0xff] }
  0xc5   :  { %v2621_v23 = vpop.f32.mrf.mxu0 }
  0xc6   :  { %v242_v24 = vadd.f32 %v2621_v23, %v3300_v22 }
  0xc7   :  { %v236_v25 = vpop.f32.mrf.mxu0 }
  0xc8   :  { %v237_v28 = vadd.f32 %v3300_v22, %v236_v25 }
  0xc9   :  { %v2624_v26 = vpop.f32.mrf.mxu0 }
  0xca   :  { %v2677_v27 = vpop.f32.mrf.mxu1  ;;  %v252_v29 = vadd.f32 %v2624_v26, %v3300_v22 }
  0xcb   :  { %v508_v30 = vadd.f32 %v2677_v27, %v242_v24  ;;  %v246_v31 = vpop.f32.mrf.mxu0 }
  0xcc   :  { %v488_v32 = vpop.f32.mrf.mxu1  ;;  %v247_v35 = vadd.f32 %v3300_v22, %v246_v31 }
  0xcd   :  { %v507_v33 = vadd.f32 %v488_v32, %v237_v28  ;;  %2971 = vtanh.f32 %v508_v30 }
  0xce   :  { %v2680_v34 = vpop.f32.mrf.mxu1 }
  0xcf   :  { %2973 = vtanh.f32 %v507_v33  ;;  %v510_v36 = vadd.f32 %v2680_v34, %v252_v29 }
  0xd0   :  { %v498_v37 = vpop.f32.mrf.mxu1 }
  0xd1   :  { %v509_v38 = vadd.f32 %v498_v37, %v247_v35  ;;  %2975 = vtanh.f32 %v510_v36 }
  0xd3   :  { %2977 = vtanh.f32 %v509_v38 }
  0xda   :  { %v2972_v39 = vpop.eup %2971 }
  0xdb   :  { %v516_v42 = vsel %vm418_vm2, %v2972_v39, 0.0 }
  0xdc   :  { %v2974_v40 = vpop.eup %2973  ;;  %v2627_v1 = vpop.f32.mrf.mxu0 }
  0xdd   :  { %v515_v41 = vsel %vm418_vm2, %v2974_v40, 0.0  ;;  %v262_v20 = vadd.f32 %v2627_v1, %v3300_v22 }
  0xde   :  { %2697 = vmatprep.mubr.msk.f32.mxu1 %vm519_vm3, %v515_v41  ;;  %v2976_v43 = vpop.eup %2975  ;;  %v256_v3 = vpop.f32.mrf.mxu0  ;;  %v41_v41 = vld [vmem:[%s3924_s0 + $0x60] sm:$0xff] }
  0xdf   :  { %2698 = vmatmul.mubr.msk.f32.vlgmr.msra.gmra.mxu1 %vm519_vm3, %v516_v42  ;;  %v518_v46 = vsel %vm418_vm2, %v2976_v43, 0.0  ;;  %v257_v9 = vadd.f32 %v3300_v22, %v256_v3  ;;  %v42_v42 = vld [vmem:[%s3924_s0 + $0x68] sm:$0xff]  ;;  %2637 = vmatprep.mubr.msk.f32.mxu0 %vm69_vm1, %v41_v41 }
  0xe0   :  { %v2978_v44 = vpop.eup %2977  ;;  %2704 = vmatpush3.msra.mxu1 %v3163_v0  ;;  %v2630_v5 = vpop.f32.mrf.mxu0  ;;  %2638 = vmatmul.mubr.msk.f32.gmra.mxu0 %vm69_vm1, %v42_v42 }
  0xe1   :  { %2705 = vmatprep.subr.mxu1 %v3171_v2  ;;  %v517_v45 = vsel %vm418_vm2, %v2978_v44, 0.0  ;;  %v272_v26 = vadd.f32 %v2630_v5, %v3300_v22 }
  0xe2   :  { %2700 = vmatprep.mubr.msk.f32.mxu1 %vm519_vm3, %v517_v45  ;;  %2706 = vmatpush3.msra.mxu1 %v3171_v2  ;;  %v266_v18 = vpop.f32.mrf.mxu0  ;;  %v45_v45 = vld [vmem:[%s3924_s0 + $0x80] sm:$0xff] }
  0xe3   :  { %2701 = vmatmul.mubr.msk.f32.gmra.mxu1 %vm519_vm3, %v518_v46  ;;  %2707 = vmatprep.subr.mxu1 %v3184_v6  ;;  %v267_v23 = vadd.f32 %v3300_v22, %v266_v18  ;;  %v46_v46 = vld [vmem:[%s3924_s0 + $0x88] sm:$0xff] }
  0xe4   :  { %2708 = vmatpush3.msra.mxu1 %v3184_v6  ;;  %2711 = vmatprep.mubr.msk.f32.mxu1 %vm418_vm2, %v2974_v40 }
  0xe5   :  { %2709 = vmatprep.subr.mxu1 %v3196_v8 }
  0xe6   :  { %2710 = vmatpush3.msra.mxu1 %v3196_v8 }
  0xe7   :  { %2712 = vmatmul.mubr.msk.f32.vlgmr.msra.gmra.mxu1 %vm418_vm2, %v2972_v39  ;;  %2717 = vmatprep.subr.mxu1 %v3210_v10 }
  0xe8   :  { %2714 = vmatprep.mubr.msk.f32.mxu1 %vm418_vm2, %v2978_v44  ;;  %2718 = vmatpush3.msra.mxu1 %v3210_v10  ;;  %v44_v44 = vld [vmem:[%s3924_s0 + $0x78] sm:$0xff] }
  0xe9   :  { %2719 = vmatprep.subr.mxu1 %v3218_v11 }
  0xea   :  { %2720 = vmatpush3.msra.mxu1 %v3218_v11 }
  0xeb   :  { %2715 = vmatmul.mubr.msk.f32.gmra.mxu1 %vm418_vm2, %v2976_v43  ;;  %2721 = vmatprep.subr.mxu1 %v3227_v12  ;;  %v43_v43 = vld [vmem:[%s3924_s0 + $0x70] sm:$0xff] }
  0xec   :  { %2722 = vmatpush3.msra.mxu1 %v3227_v12  ;;  %2640 = vmatprep.mubr.msk.f32.mxu0 %vm69_vm1, %v43_v43 }
  0xed   :  { %2723 = vmatprep.subr.mxu1 %v3234_v13  ;;  %2641 = vmatmul.mubr.msk.f32.gmra.mxu0 %vm69_vm1, %v44_v44 }
  0xee   :  { %2724 = vmatpush3.msra.mxu1 %v3234_v13  ;;  %2643 = vmatprep.mubr.msk.f32.mxu0 %vm69_vm1, %v45_v45 }
  0xef   :  { %2725 = vmatprep.subr.mxu1 %v3241_v14 }
  0xf0   :  { %2726 = vmatpush3.msra.mxu1 %v3241_v14 }
  0xf1   :  { %2727 = vmatprep.subr.mxu1 %v3250_v15  ;;  %2644 = vmatmul.mubr.msk.f32.gmra.mxu0 %vm69_vm1, %v46_v46 }
  0xf2   :  { %2728 = vmatpush3.msra.mxu1 %v3250_v15 }
  0xf3   :  { %2729 = vmatprep.subr.mxu1 %v3259_v16 }
  0xf4   :  { %2730 = vmatpush3.msra.mxu1 %v3259_v16 }
  0xf5   :  { %2731 = vmatprep.subr.mxu1 %v3268_v17 }
  0xf6   :  { %2732 = vmatpush3.msra.mxu1 %v3268_v17 }
  0xf7   :  { %2739 = vmatprep.subr.mxu1 %v3163_v0 }
 0x19f   :  { %v2699_v47 = vpop.f32.mrf.mxu1 }
 0x1a0   :  { %v604_v51 = vadd.f32 %v2699_v47, %v3345_v48  ;;  %v47_v47 = vld [vmem:[%s3924_s0 + $0x90] sm:$0xff] }
 0x1a1   :  { %v598_v49 = vpop.f32.mrf.mxu1  ;;  %2646 = vmatprep.mubr.msk.f32.mxu0 %vm69_vm1, %v47_v47 }
 0x1a2   :  { %v599_v50 = vadd.f32 %v3345_v48, %v598_v49  ;;  %v48_v49 = vld [vmem:[%s3924_s0 + $0x98] sm:$0xff] }
 0x1a3   :  { %v2702_v52 = vpop.f32.mrf.mxu1  ;;  %2647 = vmatmul.mubr.msk.f32.gmra.mxu0 %vm69_vm1, %v48_v49 }
 0x1a4   :  { %2979 = vtanh.f32 %v599_v50  ;;  %v614_v55 = vadd.f32 %v2702_v52, %v3345_v48  ;;  %v49_v50 = vld [vmem:[%s3924_s0 + $0xa0] sm:$0xff]  ;;  %v51_v52 = vld [vmem:[%s3924_s0 + $0xb0] sm:$0xff] }
 0x1a5   :  { %v608_v53 = vpop.f32.mrf.mxu1  ;;  %2981 = vtanh.f32 %v604_v51  ;;  %2649 = vmatprep.mubr.msk.f32.mxu0 %vm69_vm1, %v49_v50  ;;  %v50_v51 = vld [vmem:[%s3924_s0 + $0xa8] sm:$0xff] }
 0x1a6   :  { %v609_v54 = vadd.f32 %v3345_v48, %v608_v53  ;;  %v52_v53 = vld [vmem:[%s3924_s0 + $0xb8] sm:$0xff] }
 0x1a7   :  { %v2713_v4 = vpop.f32.mrf.mxu1  ;;  %2650 = vmatmul.mubr.msk.f32.gmra.mxu0 %vm69_vm1, %v50_v51 }
 0x1a8   :  { %2983 = vtanh.f32 %v609_v54  ;;  %v719_v25 = vadd.f32 %v2713_v4, %v262_v20  ;;  %2652 = vmatprep.mubr.msk.f32.mxu0 %vm69_vm1, %v51_v52  ;;  %v53_v54 = vld [vmem:[%s3924_s0 + $0xc0] sm:$0xff] }
 0x1a9   :  { %2985 = vtanh.f32 %v614_v55  ;;  %v699_v7 = vpop.f32.mrf.mxu1  ;;  %v54_v55 = vld [vmem:[%s3924_s0 + $0xc8] sm:$0xff] }
 0x1aa   :  { %v718_v21 = vadd.f32 %v699_v7, %v257_v9 }
 0x1ab   :  { %v2716_v19 = vpop.f32.mrf.mxu1  ;;  %2653 = vmatmul.mubr.msk.f32.gmra.mxu0 %vm69_vm1, %v52_v53 }
 0x1ac   :  { %2987 = vtanh.f32 %v718_v21  ;;  %v721_v28 = vadd.f32 %v2716_v19, %v272_v26  ;;  %2655 = vmatprep.mubr.msk.f32.mxu0 %vm69_vm1, %v53_v54 }
 0x1ad   :  { %v709_v24 = vpop.f32.mrf.mxu1  ;;  %2989 = vtanh.f32 %v719_v25 }
 0x1ae   :  { %v720_v27 = vadd.f32 %v709_v24, %v267_v23 }
 0x1af   :  { %2656 = vmatmul.mubr.msk.f32.gmra.mxu0 %vm69_vm1, %v54_v55 }
 0x1b0   :  { %2991 = vtanh.f32 %v720_v27  ;;  %2658 = vmatprep.mubr.msk.f32.mxu0 %vm69_vm1, %v55_v56 }
 0x1b1   :  { %v2980_v58 = vpop.eup %2979  ;;  %2993 = vtanh.f32 %v721_v28 }
 0x1b2   :  { %730 = vrot.lane.b32.xlu0 %v2980_v58, %s3114_s9  ;;  %v2982_v61 = vpop.eup %2981  ;;  %v57_v58 = vld [vmem:[%s3924_s0 + $0xe0] sm:$0xff] }
 0x1b3   :  { %2659 = vmatmul.mubr.msk.f32.gmra.mxu0 %vm69_vm1, %v56_v57 }
 0x1b4   :  { %2661 = vmatprep.mubr.msk.f32.mxu0 %vm69_vm1, %v57_v58 }
 0x1b5   :  { %v2984_v62 = vpop.eup %2983 }
 0x1b6   :  { %734 = vrot.lane.b32.xlu1 %v2984_v62, %s3114_s9  ;;  %732 = vrot.lane.b32.xlu0 %v2982_v61, %s3114_s9  ;;  %v2986_v63 = vpop.eup %2985  ;;  %v60_v61 = vld [vmem:[%s3924_s0 + $0xf8] sm:$0xff]  ;;  %v2633_v62 = vpop.f32.mrf.mxu0 }
 0x1b7   :  { %2662 = vmatmul.mubr.msk.f32.gmra.mxu0 %vm69_vm1, %v58_v59  ;;  %v282_v19 = vadd.f32 %v2633_v62, %v3300_v22 }
 0x1b8   :  { %2664 = vmatprep.mubr.msk.f32.mxu0 %vm69_vm1, %v59_v60  ;;  %v276_v1 = vpop.f32.mrf.mxu0 }
 0x1b9   :  { %v2988_v29 = vpop.eup %2987  ;;  %v277_v23 = vadd.f32 %v3300_v22, %v276_v1 }
 0x1ba   :  { %736 = vrot.lane.b32.xlu1 %v2986_v63, %s3114_s9  ;;  %v2990_v32 = vpop.eup %2989  ;;  %v2636_v9 = vpop.f32.mrf.mxu0 }
 0x1bb   :  { %2665 = vmatmul.mubr.msk.f32.gmra.mxu0 %vm69_vm1, %v60_v61  ;;  %v292_v27 = vadd.f32 %v2636_v9, %v3300_v22 }
 0x1bc   :  { %v286_v25 = vpop.f32.mrf.mxu0 }
 0x1bd   :  { %v2992_v33 = vpop.eup %2991 }
 0x1be   :  { %v2994_v38 = vpop.eup %2993  ;;  %v2639_v52 = vpop.f32.mrf.mxu0 }
 0x1bf   :  { %v302_v55 = vadd.f32 %v2639_v52, %v3300_v22 }
 0x1c0   :  { %v296_v53 = vpop.f32.mrf.mxu0 }
 0x1c1   :  { %v297_v56 = vadd.f32 %v3300_v22, %v296_v53 }
 0x1c2   :  { %v2642_v54 = vpop.f32.mrf.mxu0 }
 0x1c3   :  { %v312_v60 = vadd.f32 %v2642_v54, %v3300_v22 }
 0x1c4   :  { %v306_v58 = vpop.f32.mrf.mxu0 }
 0x224   :  { %v731_v30 = vpop.permute.xlu0 %730 }
 0x225   :  { %v742_v31 = vsel %vm418_vm2, %v2988_v29, %v731_v30  ;;  %v287_v30 = vadd.f32 %v3300_v22, %v286_v25 }
 0x226   :  { %2733 = vmatprep.mubr.msk.f32.mxu1 %vm519_vm3, %v742_v31 }
 0x228   :  { %v735_v34 = vpop.permute.xlu1 %734  ;;  %v733_v35 = vpop.permute.xlu0 %732 }
 0x229   :  { %v744_v36 = vsel %vm418_vm2, %v2992_v33, %v735_v34  ;;  %v743_v37 = vsel %vm418_vm2, %v2990_v32, %v733_v35 }
 0x22a   :  { %2734 = vmatmul.mubr.msk.f32.vlgmr.msra.gmra.mxu1 %vm519_vm3, %v743_v37 }
 0x22b   :  { %2736 = vmatprep.mubr.msk.f32.mxu1 %vm519_vm3, %v744_v36  ;;  %2740 = vmatpush3.msra.mxu1 %v3163_v0 }
 0x22c   :  { %v737_v39 = vpop.permute.xlu1 %736  ;;  %2741 = vmatprep.subr.mxu1 %v3171_v2 }
 0x22d   :  { %v745_v40 = vsel %vm418_vm2, %v2994_v38, %v737_v39  ;;  %2742 = vmatpush3.msra.mxu1 %v3171_v2 }
 0x22e   :  { %2737 = vmatmul.mubr.msk.f32.gmra.mxu1 %vm519_vm3, %v745_v40  ;;  %2743 = vmatprep.subr.mxu1 %v3184_v6 }
 0x22f   :  { %2744 = vmatpush3.msra.mxu1 %v3184_v6  ;;  %2747 = vmatprep.mubr.msk.f32.mxu1 %vm418_vm2, %v2988_v29 }
 0x230   :  { %2745 = vmatprep.subr.mxu1 %v3196_v8 }
 0x231   :  { %2746 = vmatpush3.msra.mxu1 %v3196_v8 }
 0x232   :  { %2748 = vmatmul.mubr.msk.f32.vlgmr.msra.gmra.mxu1 %vm418_vm2, %v2990_v32  ;;  %2775 = vmatprep.subr.mxu1 %v3163_v0 }
 0x233   :  { %2750 = vmatprep.mubr.msk.f32.mxu1 %vm418_vm2, %v2992_v33  ;;  %2776 = vmatpush3.msra.mxu1 %v3163_v0 }
 0x234   :  { %2777 = vmatprep.subr.mxu1 %v3171_v2 }
 0x235   :  { %2778 = vmatpush3.msra.mxu1 %v3171_v2 }
 0x236   :  { %2751 = vmatmul.mubr.msk.f32.gmra.mxu1 %vm418_vm2, %v2994_v38  ;;  %2779 = vmatprep.subr.mxu1 %v3184_v6 }
 0x237   :  { %2780 = vmatpush3.msra.mxu1 %v3184_v6 }
 0x238   :  { %2781 = vmatprep.subr.mxu1 %v3196_v8 }
 0x239   :  { %2782 = vmatpush3.msra.mxu1 %v3196_v8 }
 0x23a   :  { %2789 = vmatprep.subr.mxu1 %v3210_v10 }
 0x2ea   :  { %v2735_v63 = vpop.f32.mrf.mxu1 }
 0x2eb   :  { %v830_v3 = vadd.f32 %v2735_v63, %v3345_v48  ;;  %v307_v63 = vadd.f32 %v3300_v22, %v306_v58 }
 0x2ec   :  { %v824_v4 = vpop.f32.mrf.mxu1 }
 0x2ed   :  { %2995 = vtanh.f32 %v830_v3  ;;  %v825_v5 = vadd.f32 %v3345_v48, %v824_v4 }
 0x2ee   :  { %v2738_v7 = vpop.f32.mrf.mxu1 }
 0x2ef   :  { %2997 = vtanh.f32 %v825_v5  ;;  %v840_v18 = vadd.f32 %v2738_v7, %v3345_v48 }
 0x2f0   :  { %v834_v20 = vpop.f32.mrf.mxu1 }
 0x2f1   :  { %2999 = vtanh.f32 %v840_v18  ;;  %v835_v21 = vadd.f32 %v3345_v48, %v834_v20  ;;  %v2645_v20 = vpop.f32.mrf.mxu0 }
 0x2f2   :  { %v2749_v24 = vpop.f32.mrf.mxu1 }
 0x2f3   :  { %3001 = vtanh.f32 %v835_v21  ;;  %v945_v26 = vadd.f32 %v2749_v24, %v282_v19  ;;  %v316_v21 = vpop.f32.mrf.mxu0 }
 0x2f4   :  { %v925_v28 = vpop.f32.mrf.mxu1  ;;  %v317_v53 = vadd.f32 %v3300_v22, %v316_v21 }
 0x2f5   :  { %v944_v29 = vadd.f32 %v925_v28, %v277_v23  ;;  %v2648_v23 = vpop.f32.mrf.mxu0 }
 0x2f6   :  { %v2752_v31 = vpop.f32.mrf.mxu1 }
 0x2f7   :  { %3003 = vtanh.f32 %v944_v29  ;;  %v947_v32 = vadd.f32 %v2752_v31, %v292_v27  ;;  %v326_v24 = vpop.f32.mrf.mxu0 }
 0x2f8   :  { %3005 = vtanh.f32 %v945_v26  ;;  %v935_v33 = vpop.f32.mrf.mxu1 }
 0x2f9   :  { %v946_v34 = vadd.f32 %v935_v33, %v287_v30  ;;  %v3567_v25 = vpop.f32.mrf.mxu0 }
 0x2fa   :  { %v2996_v35 = vpop.eup %2995 }
 0x2fb   :  { %3007 = vtanh.f32 %v946_v34  ;;  %958 = vrot.lane.b32.xlu1 %v2996_v35, %s3114_s9  ;;  %v3569_v26 = vpop.f32.mrf.mxu0 }
 0x2fc   :  { %v2998_v36 = vpop.eup %2997  ;;  %3009 = vtanh.f32 %v947_v32 }
 0x2fd   :  { %956 = vrot.lane.b32.xlu0 %v2998_v36, %s3114_s9  ;;  %v3571_v27 = vpop.f32.mrf.mxu0 }
 0x2fe   :  { %v3000_v37 = vpop.eup %2999 }
 0x2ff   :  { %962 = vrot.lane.b32.xlu1 %v3000_v37, %s3114_s9  ;;  %v3573_v28 = vpop.f32.mrf.mxu0 }
 0x300   :  { %v3002_v38 = vpop.eup %3001 }
 0x301   :  { %960 = vrot.lane.b32.xlu0 %v3002_v38, %s3114_s9  ;;  %v3575_v29 = vpop.f32.mrf.mxu0 }
 0x303   :  { %v3577_v30 = vpop.f32.mrf.mxu0 }
 0x304   :  { %v3004_v39 = vpop.eup %3003 }
 0x305   :  { %v3006_v40 = vpop.eup %3005  ;;  %2783 = vmatprep.mubr.msk.f32.mxu1 %vm418_vm2, %v3004_v39  ;;  %v3579_v31 = vpop.f32.mrf.mxu0 }
 0x306   :  { %2784 = vmatmul.mubr.msk.f32.vlgmr.msra.gmra.mxu1 %vm418_vm2, %v3006_v40 }
 0x307   :  { %2790 = vmatpush3.msra.mxu1 %v3210_v10  ;;  %v3581_v32 = vpop.f32.mrf.mxu0 }
 0x308   :  { %v3008_v41 = vpop.eup %3007  ;;  %2791 = vmatprep.subr.mxu1 %v3218_v11 }
 0x309   :  { %v3010_v42 = vpop.eup %3009  ;;  %2786 = vmatprep.mubr.msk.f32.mxu1 %vm418_vm2, %v3008_v41  ;;  %2792 = vmatpush3.msra.mxu1 %v3218_v11  ;;  %v3583_v33 = vpop.f32.mrf.mxu0 }
 0x30a   :  { %2787 = vmatmul.mubr.msk.f32.gmra.mxu1 %vm418_vm2, %v3010_v42  ;;  %2793 = vmatprep.subr.mxu1 %v3227_v12 }
 0x30b   :  { %2794 = vmatpush3.msra.mxu1 %v3227_v12  ;;  %v3585_v34 = vpop.f32.mrf.mxu0 }
 0x30c   :  { %2795 = vmatprep.subr.mxu1 %v3234_v13 }
 0x30d   :  { %2796 = vmatpush3.msra.mxu1 %v3234_v13  ;;  %v3587_v35 = vpop.f32.mrf.mxu0 }
 0x30e   :  { %2797 = vmatprep.subr.mxu1 %v3241_v14 }
 0x30f   :  { %2798 = vmatpush3.msra.mxu1 %v3241_v14  ;;  %v3589_v36 = vpop.f32.mrf.mxu0 }
 0x310   :  { %2799 = vmatprep.subr.mxu1 %v3250_v15 }
 0x311   :  { %2800 = vmatpush3.msra.mxu1 %v3250_v15 }
 0x312   :  { %2801 = vmatprep.subr.mxu1 %v3259_v16 }
 0x313   :  { %2802 = vmatpush3.msra.mxu1 %v3259_v16 }
 0x314   :  { %2803 = vmatprep.subr.mxu1 %v3268_v17 }
 0x315   :  { %2804 = vmatpush3.msra.mxu1 %v3268_v17 }
 0x316   :  { %2847 = vmatprep.subr.mxu1 %v3163_v0 }
 0x36d   :  { %v959_v43 = vpop.permute.xlu1 %958 }
 0x36e   :  { %v969_v46 = vsel %vm418_vm2, %v3006_v40, %v959_v43 }
 0x36f   :  { %v957_v44 = vpop.permute.xlu0 %956 }
 0x370   :  { %v968_v45 = vsel %vm418_vm2, %v3004_v39, %v957_v44 }
 0x371   :  { %2769 = vmatprep.mubr.msk.f32.mxu0 %vm519_vm3, %v968_v45  ;;  %v963_v47 = vpop.permute.xlu1 %962 }
 0x372   :  { %2770 = vmatmul.mubr.msk.f32.vlgmr.msra.gmra.mxu0 %vm519_vm3, %v969_v46  ;;  %v971_v51 = vsel %vm418_vm2, %v3010_v42, %v963_v47 }
 0x373   :  { %v961_v49 = vpop.permute.xlu0 %960  ;;  %2812 = vmatpush3.msra.mxu0 %v3163_v0 }
 0x374   :  { %v970_v50 = vsel %vm418_vm2, %v3008_v41, %v961_v49  ;;  %2813 = vmatprep.subr.mxu0 %v3171_v2 }
 0x375   :  { %2772 = vmatprep.mubr.msk.f32.mxu0 %vm519_vm3, %v970_v50  ;;  %2814 = vmatpush3.msra.mxu0 %v3171_v2 }
 0x376   :  { %2773 = vmatmul.mubr.msk.f32.gmra.mxu0 %vm519_vm3, %v971_v51  ;;  %2815 = vmatprep.subr.mxu0 %v3184_v6 }
 0x377   :  { %2816 = vmatpush3.msra.mxu0 %v3184_v6 }
 0x378   :  { %2817 = vmatprep.subr.mxu0 %v3196_v8 }
 0x379   :  { %2818 = vmatpush3.msra.mxu0 %v3196_v8 }
 0x37a   :  { %2825 = vmatprep.subr.mxu0 %v3210_v10 }
 0x3c6   :  { %v2785_v57 = vpop.f32.mrf.mxu1 }
 0x3c7   :  { %v1171_v59 = vadd.f32 %v2785_v57, %v302_v55  ;;  %v322_v55 = vadd.f32 %v2645_v20, %v3300_v22  ;;  %v327_v57 = vadd.f32 %v3300_v22, %v326_v24 }
 0x3c8   :  { %v1151_v61 = vpop.f32.mrf.mxu1 }
 0x3c9   :  { %v1170_v62 = vadd.f32 %v1151_v61, %v297_v56 }
 0x3ca   :  { %v2788_v1 = vpop.f32.mrf.mxu1 }
 0x3cb   :  { %3011 = vtanh.f32 %v1170_v62  ;;  %v1173_v3 = vadd.f32 %v2788_v1, %v312_v60  ;;  %v332_v60 = vadd.f32 %v2648_v23, %v3300_v22 }
 0x3cc   :  { %3013 = vtanh.f32 %v1171_v59  ;;  %v1161_v4 = vpop.f32.mrf.mxu1 }
 0x3cd   :  { %v1172_v5 = vadd.f32 %v1161_v4, %v307_v63 }
 0x3cf   :  { %3015 = vtanh.f32 %v1172_v5 }
 0x3d0   :  { %3017 = vtanh.f32 %v1173_v3 }
 0x3d8   :  { %v3535_v7 = vpop.eup %3011 }
 0x3d9   :  { %v3537_v9 = vpop.eup %3013  ;;  %2819 = vmatprep.mubr.msk.f32.mxu0 %vm418_vm2, %v3535_v7 }
 0x3da   :  { %2820 = vmatmul.mubr.msk.f32.vlgmr.msra.gmra.mxu0 %vm418_vm2, %v3537_v9 }
 0x3db   :  { %2826 = vmatpush3.msra.mxu0 %v3210_v10 }
 0x3dc   :  { %v3544_v18 = vpop.eup %3015  ;;  %2827 = vmatprep.subr.mxu0 %v3218_v11 }
 0x3dd   :  { %v3547_v19 = vpop.eup %3017  ;;  %2822 = vmatprep.mubr.msk.f32.mxu0 %vm418_vm2, %v3544_v18  ;;  %2828 = vmatpush3.msra.mxu0 %v3218_v11 }
 0x3de   :  { %2823 = vmatmul.mubr.msk.f32.gmra.mxu0 %vm418_vm2, %v3547_v19  ;;  %2829 = vmatprep.subr.mxu0 %v3227_v12 }
 0x3df   :  { %2830 = vmatpush3.msra.mxu0 %v3227_v12 }
 0x3e0   :  { %2831 = vmatprep.subr.mxu0 %v3234_v13 }
 0x3e1   :  { %2832 = vmatpush3.msra.mxu0 %v3234_v13 }
 0x3e2   :  { %2833 = vmatprep.subr.mxu0 %v3241_v14 }
 0x3e3   :  { %2834 = vmatpush3.msra.mxu0 %v3241_v14 }
 0x3e4   :  { %2835 = vmatprep.subr.mxu0 %v3250_v15 }
 0x3e5   :  { %2836 = vmatpush3.msra.mxu0 %v3250_v15 }
 0x3e6   :  { %2837 = vmatprep.subr.mxu0 %v3259_v16 }
 0x3e7   :  { %2838 = vmatpush3.msra.mxu0 %v3259_v16 }
 0x3e8   :  { %2839 = vmatprep.subr.mxu0 %v3268_v17 }
 0x3e9   :  { %2840 = vmatpush3.msra.mxu0 %v3268_v17 }
 0x3ea   :  { %2883 = vmatprep.subr.mxu0 %v3163_v0 }
 0x432   :  { %v2771_v37 = vpop.f32.mrf.mxu0 }
 0x433   :  { %v1056_v38 = vadd.f32 %v2771_v37, %v3345_v48 }
 0x434   :  { %v1050_v39 = vpop.f32.mrf.mxu0 }
 0x435   :  { %3019 = vtanh.f32 %v1056_v38  ;;  %v1051_v40 = vadd.f32 %v3345_v48, %v1050_v39  ;;  %v337_v38 = vadd.f32 %v3300_v22, %v3569_v26 }
 0x436   :  { %v2774_v41 = vpop.f32.mrf.mxu0 }
 0x437   :  { %3021 = vtanh.f32 %v1051_v40  ;;  %v1066_v42 = vadd.f32 %v2774_v41, %v3345_v48  ;;  %v342_v40 = vadd.f32 %v3567_v25, %v3300_v22 }
 0x438   :  { %v1060_v43 = vpop.f32.mrf.mxu0 }
 0x439   :  { %3023 = vtanh.f32 %v1066_v42  ;;  %v1061_v44 = vadd.f32 %v3345_v48, %v1060_v43  ;;  %v347_v42 = vadd.f32 %v3300_v22, %v3573_v28 }
 0x43b   :  { %3025 = vtanh.f32 %v1061_v44 }
 0x442   :  { %v3020_v45 = vpop.eup %3019 }
 0x443   :  { %1184 = vrot.lane.b32.xlu1 %v3020_v45, %s3114_s9  ;;  %v352_v45 = vadd.f32 %v3571_v27, %v3300_v22  ;;  %v3680_v22 = vld [vmem:[%s3922_s2 + $0x18] sm:$0xff] }
 0x444   :  { %v3022_v46 = vpop.eup %3021 }
 0x445   :  { %1182 = vrot.lane.b32.xlu0 %v3022_v46, %s3114_s9 }
 0x446   :  { %v3024_v47 = vpop.eup %3023 }
 0x447   :  { %1188 = vrot.lane.b32.xlu1 %v3024_v47, %s3114_s9 }
 0x448   :  { %v3026_v49 = vpop.eup %3025 }
 0x449   :  { %1186 = vrot.lane.b32.xlu0 %v3026_v49, %s3114_s9 }
 0x49a   :  { %v2821_v50 = vpop.f32.mrf.mxu0 }
 0x49b   :  { %v1397_v58 = vadd.f32 %v2821_v50, %v322_v55  ;;  %v3710_v55 = vld [vmem:[%s3922_s2] sm:$0xff] }
 0x49c   :  { %v1377_v51 = vpop.f32.mrf.mxu0 }
 0x49d   :  { %v1396_v54 = vadd.f32 %v1377_v51, %v317_v53  ;;  %v3688_v51 = vld [vmem:[%s3922_s2 + $0x10] sm:$0xff] }
 0x49e   :  { %v2824_v52 = vpop.f32.mrf.mxu0 }
 0x49f   :  { %3027 = vtanh.f32 %v1396_v54  ;;  %v1399_v61 = vadd.f32 %v2824_v52, %v332_v60  ;;  %v3701_v54 = vld [vmem:[%s3922_s2 + $0x8] sm:$0xff] }
 0x4a0   :  { %v1387_v56 = vpop.f32.mrf.mxu0  ;;  %3029 = vtanh.f32 %v1397_v58  ;;  %v3723_v58 = vld [vmem:[%s3925_s4 + $0x38] sm:$0xff] }
 0x4a1   :  { %v1398_v59 = vadd.f32 %v1387_v56, %v327_v57 }
 0x4a3   :  { %3031 = vtanh.f32 %v1398_v59  ;;  %v3732_v59 = vld [vmem:[%s3925_s4 + $0x30] sm:$0xff] }
 0x4a4   :  { %3033 = vtanh.f32 %v1399_v61  ;;  %v3743_v61 = vld [vmem:[%s3925_s4 + $0x28] sm:$0xff] }
 0x4b5   :  { %v1185_v62 = vpop.permute.xlu1 %1184 }
 0x4b6   :  { %v1195_v3 = vsel %vm418_vm2, %v3537_v9, %v1185_v62  ;;  %v3750_v62 = vld [vmem:[%s3925_s4 + $0x20] sm:$0xff] }
 0x4b7   :  { %v1183_v63 = vpop.permute.xlu0 %1182 }
 0x4b8   :  { %v1194_v1 = vsel %vm418_vm2, %v3535_v7, %v1183_v63  ;;  %v3617_v7 = vpop.eup %3027  ;;  %v3757_v63 = vld [vmem:[%s3925_s4 + $0x18] sm:$0xff] }
 0x4b9   :  { %2805 = vmatprep.mubr.msk.f32.mxu1 %vm519_vm3, %v1194_v1  ;;  %v1189_v4 = vpop.permute.xlu1 %1188  ;;  %v3625_v9 = vpop.eup %3029  ;;  %v3764_v1 = vld [vmem:[%s3925_s4 + $0x10] sm:$0xff] }
 0x4ba   :  { %2806 = vmatmul.mubr.msk.f32.vlgmr.msra.gmra.mxu1 %vm519_vm3, %v1195_v3  ;;  %v1197_v21 = vsel %vm418_vm2, %v3547_v19, %v1189_v4  ;;  %v3771_v3 = vld [vmem:[%s3925_s4 + $0x8] sm:$0xff]  ;;  %v3778_v4 = vld [vmem:[%s3925_s4] sm:$0xff] }
 0x4bb   :  { %2848 = vmatpush3.msra.mxu1 %v3163_v0  ;;  %v1187_v5 = vpop.permute.xlu0 %1186 }
 0x4bc   :  { %v1196_v20 = vsel %vm418_vm2, %v3544_v18, %v1187_v5  ;;  %2849 = vmatprep.subr.mxu1 %v3171_v2  ;;  %v3628_v18 = vpop.eup %3031 }
 0x4bd   :  { %2808 = vmatprep.mubr.msk.f32.mxu1 %vm519_vm3, %v1196_v20  ;;  %2850 = vmatpush3.msra.mxu1 %v3171_v2  ;;  %v3637_v2 = vpop.eup %3033 }
 0x4be   :  { %2809 = vmatmul.mubr.msk.f32.gmra.mxu1 %vm519_vm3, %v1197_v21  ;;  %2851 = vmatprep.subr.mxu1 %v3184_v6 }
 0x4bf   :  { %2852 = vmatpush3.msra.mxu1 %v3184_v6  ;;  %2855 = vmatprep.mubr.msk.f32.mxu1 %vm418_vm2, %v3617_v7 }
 0x4c0   :  { %2853 = vmatprep.subr.mxu1 %v3196_v8 }
 0x4c1   :  { %2854 = vmatpush3.msra.mxu1 %v3196_v8 }
 0x4c2   :  { %2856 = vmatmul.mubr.msk.f32.vlgmr.msra.gmra.mxu1 %vm418_vm2, %v3625_v9  ;;  %2861 = vmatprep.subr.mxu1 %v3210_v10 }
 0x4c3   :  { %2858 = vmatprep.mubr.msk.f32.mxu1 %vm418_vm2, %v3628_v18  ;;  %2862 = vmatpush3.msra.mxu1 %v3210_v10 }
 0x4c4   :  { %2863 = vmatprep.subr.mxu1 %v3218_v11 }
 0x4c5   :  { %2864 = vmatpush3.msra.mxu1 %v3218_v11 }
 0x4c6   :  { %2859 = vmatmul.mubr.msk.f32.gmra.mxu1 %vm418_vm2, %v3637_v2  ;;  %2865 = vmatprep.subr.mxu1 %v3227_v12 }
 0x4c7   :  { %2866 = vmatpush3.msra.mxu1 %v3227_v12 }
 0x4c8   :  { %2867 = vmatprep.subr.mxu1 %v3234_v13 }
 0x4c9   :  { %2868 = vmatpush3.msra.mxu1 %v3234_v13 }
 0x4ca   :  { %2869 = vmatprep.subr.mxu1 %v3241_v14 }
 0x4cb   :  { %2870 = vmatpush3.msra.mxu1 %v3241_v14 }
 0x4cc   :  { %2871 = vmatprep.subr.mxu1 %v3250_v15 }
 0x4cd   :  { %2872 = vmatpush3.msra.mxu1 %v3250_v15 }
 0x4ce   :  { %2873 = vmatprep.subr.mxu1 %v3259_v16 }
 0x4cf   :  { %2874 = vmatpush3.msra.mxu1 %v3259_v16 }
 0x4d0   :  { %2875 = vmatprep.subr.mxu1 %v3268_v17 }
 0x4d1   :  { %2876 = vmatpush3.msra.mxu1 %v3268_v17 }
 0x4d2   :  { %2919 = vmatprep.subr.mxu1 %v3163_v0 }
 0x57a   :  { %v2807_v6 = vpop.f32.mrf.mxu1 }
 0x57b   :  { %v1282_v8 = vadd.f32 %v2807_v6, %v3345_v48 }
 0x57c   :  { %v1276_v10 = vpop.f32.mrf.mxu1 }
 0x57d   :  { %3035 = vtanh.f32 %v1282_v8  ;;  %v1277_v11 = vadd.f32 %v3345_v48, %v1276_v10 }
 0x57e   :  { %v2810_v12 = vpop.f32.mrf.mxu1 }
 0x57f   :  { %3037 = vtanh.f32 %v1277_v11  ;;  %v1292_v13 = vadd.f32 %v2810_v12, %v3345_v48 }
 0x580   :  { %v1286_v14 = vpop.f32.mrf.mxu1 }
 0x581   :  { %3039 = vtanh.f32 %v1292_v13  ;;  %v1287_v15 = vadd.f32 %v3345_v48, %v1286_v14 }
 0x582   :  { %v2857_v23 = vpop.f32.mrf.mxu1 }
 0x583   :  { %3041 = vtanh.f32 %v1287_v15  ;;  %v1623_v43 = vadd.f32 %v2857_v23, %v342_v40 }
 0x584   :  { %v1603_v24 = vpop.f32.mrf.mxu1 }
 0x585   :  { %v1622_v39 = vadd.f32 %v1603_v24, %v337_v38 }
 0x586   :  { %v2860_v37 = vpop.f32.mrf.mxu1 }
 0x587   :  { %3043 = vtanh.f32 %v1622_v39  ;;  %v1625_v46 = vadd.f32 %v2860_v37, %v352_v45 }
 0x588   :  { %v1613_v41 = vpop.f32.mrf.mxu1  ;;  %3045 = vtanh.f32 %v1623_v43 }
 0x589   :  { %v1624_v44 = vadd.f32 %v1613_v41, %v347_v42 }
 0x58a   :  { %v3036_v16 = vpop.eup %3035 }
 0x58b   :  { %1410 = vrot.lane.b32.xlu1 %v3036_v16, %s3114_s9  ;;  %3047 = vtanh.f32 %v1624_v44  ;;  %v3793_v16 = vld [vmem:[%s3926_s3] ss:$0 sm:$0xff] }
 0x58c   :  { %v3038_v0 = vpop.eup %3037  ;;  %3049 = vtanh.f32 %v1625_v46  ;;  %v367_v24 = vadd.f32 %v3793_v16, %v3581_v32  ;;  %v372_v39 = vadd.f32 %v3793_v16, %v3579_v31 }
 0x58d   :  { %1408 = vrot.lane.b32.xlu0 %v3038_v0, %s3114_s9  ;;  %v357_v0 = vadd.f32 %v3793_v16, %v3577_v30 }
 0x58e   :  { %v3040_v17 = vpop.eup %3039 }
 0x58f   :  { %1414 = vrot.lane.b32.xlu1 %v3040_v17, %s3114_s9 }
 0x590   :  { %v3042_v19 = vpop.eup %3041 }
 0x591   :  { %1412 = vrot.lane.b32.xlu0 %v3042_v19, %s3114_s9  ;;  %v362_v19 = vadd.f32 %v3793_v16, %v3575_v29 }
 0x594   :  { %v3695_v53 = vpop.eup %3043 }
 0x595   :  { %v3713_v56 = vpop.eup %3045 }
 0x598   :  { %v3716_v57 = vpop.eup %3047 }
 0x599   :  { %v3735_v60 = vpop.eup %3049 }
 0x5fd   :  { %v1411_v47 = vpop.permute.xlu1 %1410 }
 0x5fe   :  { %v1421_v25 = vsel %vm418_vm2, %v3625_v9, %v1411_v47 }
 0x5ff   :  { %v1409_v49 = vpop.permute.xlu0 %1408 }
 0x600   :  { %v1420_v26 = vsel %vm418_vm2, %v3617_v7, %v1409_v49 }
 0x601   :  { %2841 = vmatprep.mubr.msk.f32.mxu0 %vm519_vm3, %v1420_v26  ;;  %v1415_v28 = vpop.permute.xlu1 %1414 }
 0x602   :  { %2842 = vmatmul.mubr.msk.f32.vlgmr.msra.gmra.mxu0 %vm519_vm3, %v1421_v25  ;;  %v1423_v52 = vsel %vm418_vm2, %v3637_v2, %v1415_v28 }
 0x603   :  { %2884 = vmatpush3.msra.mxu0 %v3680_v22  ;;  %v1413_v27 = vpop.permute.xlu0 %1412 }
 0x604   :  { %v1422_v50 = vsel %vm418_vm2, %v3628_v18, %v1413_v27  ;;  %2885 = vmatprep.subr.mxu0 %v3688_v51 }
 0x605   :  { %2844 = vmatprep.mubr.msk.f32.mxu0 %vm519_vm3, %v1422_v50  ;;  %2886 = vmatpush3.msra.mxu0 %v3688_v51  ;;  %v3847_v50 = vld [vmem:[%s3927_s5] ss:$0 sm:$0xff] }
 0x606   :  { %2845 = vmatmul.mubr.msk.f32.gmra.mxu0 %vm519_vm3, %v1423_v52  ;;  %2887 = vmatprep.subr.mxu0 %v3701_v54 }
 0x607   :  { %2888 = vmatpush3.msra.mxu0 %v3701_v54  ;;  %2891 = vmatprep.mubr.msk.f32.mxu0 %vm418_vm2, %v3695_v53 }
 0x608   :  { %2889 = vmatprep.subr.mxu0 %v3710_v55 }
 0x609   :  { %2890 = vmatpush3.msra.mxu0 %v3710_v55 }
 0x60a   :  { %2892 = vmatmul.mubr.msk.f32.vlgmr.msra.gmra.mxu0 %vm418_vm2, %v3713_v56  ;;  %2897 = vmatprep.subr.mxu0 %v3723_v58 }
 0x60b   :  { %2894 = vmatprep.mubr.msk.f32.mxu0 %vm418_vm2, %v3716_v57  ;;  %2898 = vmatpush3.msra.mxu0 %v3723_v58 }
 0x60c   :  { %2899 = vmatprep.subr.mxu0 %v3732_v59 }
 0x60d   :  { %2900 = vmatpush3.msra.mxu0 %v3732_v59 }
 0x60e   :  { %2895 = vmatmul.mubr.msk.f32.gmra.mxu0 %vm418_vm2, %v3735_v60  ;;  %2901 = vmatprep.subr.mxu0 %v3743_v61 }
 0x60f   :  { %2902 = vmatpush3.msra.mxu0 %v3743_v61 }
 0x610   :  { %2903 = vmatprep.subr.mxu0 %v3750_v62 }
 0x611   :  { %2904 = vmatpush3.msra.mxu0 %v3750_v62 }
 0x612   :  { %2905 = vmatprep.subr.mxu0 %v3757_v63 }
 0x613   :  { %2906 = vmatpush3.msra.mxu0 %v3757_v63 }
 0x614   :  { %2907 = vmatprep.subr.mxu0 %v3764_v1 }
 0x615   :  { %2908 = vmatpush3.msra.mxu0 %v3764_v1 }
 0x616   :  { %2909 = vmatprep.subr.mxu0 %v3771_v3 }
 0x617   :  { %2910 = vmatpush3.msra.mxu0 %v3771_v3 }
 0x618   :  { %2911 = vmatprep.subr.mxu0 %v3778_v4 }
 0x619   :  { %2912 = vmatpush3.msra.mxu0 %v3778_v4 }
 0x6c2   :  { %v2843_v5 = vpop.f32.mrf.mxu0 }
 0x6c3   :  { %v1508_v20 = vadd.f32 %v2843_v5, %v3345_v48 }
 0x6c4   :  { %v1502_v21 = vpop.f32.mrf.mxu0 }
 0x6c5   :  { %3051 = vtanh.f32 %v1508_v20  ;;  %v1503_v7 = vadd.f32 %v3345_v48, %v1502_v21 }
 0x6c6   :  { %v2846_v9 = vpop.f32.mrf.mxu0 }
 0x6c7   :  { %3053 = vtanh.f32 %v1503_v7  ;;  %v1518_v18 = vadd.f32 %v2846_v9, %v3345_v48 }
 0x6c8   :  { %v1512_v2 = vpop.f32.mrf.mxu0 }
 0x6c9   :  { %3055 = vtanh.f32 %v1518_v18  ;;  %v1513_v6 = vadd.f32 %v3345_v48, %v1512_v2 }
 0x6ca   :  { %v2893_v13 = vpop.f32.mrf.mxu0 }
 0x6cb   :  { %3057 = vtanh.f32 %v1513_v6  ;;  %v1849_v37 = vadd.f32 %v2893_v13, %v362_v19 }
 0x6cc   :  { %v1829_v14 = vpop.f32.mrf.mxu0 }
 0x6cd   :  { %v1848_v17 = vadd.f32 %v1829_v14, %v357_v0  ;;  %v377_v14 = vadd.f32 %v3793_v16, %v3585_v34 }
 0x6ce   :  { %v2896_v15 = vpop.f32.mrf.mxu0 }
 0x6cf   :  { %3059 = vtanh.f32 %v1848_v17  ;;  %v1851_v40 = vadd.f32 %v2896_v15, %v372_v39  ;;  %v382_v15 = vadd.f32 %v3793_v16, %v3583_v33 }
 0x6d0   :  { %v1839_v23 = vpop.f32.mrf.mxu0  ;;  %3061 = vtanh.f32 %v1849_v37 }
 0x6d1   :  { %v1850_v38 = vadd.f32 %v1839_v23, %v367_v24  ;;  %v387_v23 = vadd.f32 %v3793_v16, %v3589_v36  ;;  %v392_v24 = vadd.f32 %v3793_v16, %v3587_v35 }
 0x6d2   :  { %v3052_v8 = vpop.eup %3051 }
 0x6d3   :  { %1636 = vrot.lane.b32.xlu1 %v3052_v8, %s3114_s9  ;;  %3063 = vtanh.f32 %v1850_v38 }
 0x6d4   :  { %v3054_v10 = vpop.eup %3053  ;;  %3065 = vtanh.f32 %v1851_v40 }
 0x6d5   :  { %1634 = vrot.lane.b32.xlu0 %v3054_v10, %s3114_s9 }
 0x6d6   :  { %v3056_v11 = vpop.eup %3055 }
 0x6d7   :  { %1640 = vrot.lane.b32.xlu1 %v3056_v11, %s3114_s9 }
 0x6d8   :  { %v3058_v12 = vpop.eup %3057 }
 0x6d9   :  { %1638 = vrot.lane.b32.xlu0 %v3058_v12, %s3114_s9 }
 0x6dc   :  { %v3060_v45 = vpop.eup %3059 }
 0x6dd   :  { %v3062_v46 = vpop.eup %3061 }
 0x6e0   :  { %v3064_v47 = vpop.eup %3063 }
 0x6e1   :  { %v3066_v49 = vpop.eup %3065 }
 0x745   :  { %v1637_v41 = vpop.permute.xlu1 %1636 }
 0x746   :  { %v1647_v29 = vsel %vm418_vm2, %v3713_v56, %v1637_v41 }
 0x747   :  { %v1635_v42 = vpop.permute.xlu0 %1634 }
 0x748   :  { %v1646_v30 = vsel %vm418_vm2, %v3695_v53, %v1635_v42 }
 0x749   :  { %2877 = vmatprep.mubr.msk.f32.mxu1 %vm519_vm3, %v1646_v30  ;;  %v1641_v32 = vpop.permute.xlu1 %1640 }
 0x74a   :  { %2878 = vmatmul.mubr.msk.f32.vlgmr.msra.gmra.mxu1 %vm519_vm3, %v1647_v29  ;;  %v1649_v44 = vsel %vm418_vm2, %v3735_v60, %v1641_v32 }
 0x74b   :  { %2920 = vmatpush3.msra.mxu1 %v3680_v22  ;;  %v1639_v31 = vpop.permute.xlu0 %1638 }
 0x74c   :  { %v1648_v43 = vsel %vm418_vm2, %v3716_v57, %v1639_v31  ;;  %2921 = vmatprep.subr.mxu1 %v3688_v51  ;;  %v410_v31 = vld [vmem:[%s3928_s6 + $0x18] sm:$0xff] }
 0x74d   :  { %2880 = vmatprep.mubr.msk.f32.mxu1 %vm519_vm3, %v1648_v43  ;;  %2922 = vmatpush3.msra.mxu1 %v3688_v51  ;;  %v409_v43 = vld [vmem:[%s3928_s6 + $0x10] sm:$0xff] }
 0x74e   :  { %2881 = vmatmul.mubr.msk.f32.gmra.mxu1 %vm519_vm3, %v1649_v44  ;;  %2923 = vmatprep.subr.mxu1 %v3701_v54  ;;  %v408_v44 = vld [vmem:[%s3928_s6 + $0x8] sm:$0xff] }
 0x74f   :  { %2924 = vmatpush3.msra.mxu1 %v3701_v54  ;;  %2927 = vmatprep.mubr.msk.f32.mxu1 %vm418_vm2, %v3060_v45 }
 0x750   :  { %2925 = vmatprep.subr.mxu1 %v3710_v55  ;;  %2955 = vmatprep.subr.mxu0 %v410_v31 }
 0x751   :  { %2926 = vmatpush3.msra.mxu1 %v3710_v55 }
 0x752   :  { %2928 = vmatmul.mubr.msk.f32.vlgmr.msra.gmra.mxu1 %vm418_vm2, %v3062_v46  ;;  %2933 = vmatprep.subr.mxu1 %v3723_v58 }
 0x753   :  { %2930 = vmatprep.mubr.msk.f32.mxu1 %vm418_vm2, %v3064_v47  ;;  %2934 = vmatpush3.msra.mxu1 %v3723_v58 }
 0x754   :  { %2935 = vmatprep.subr.mxu1 %v3732_v59 }
 0x755   :  { %2936 = vmatpush3.msra.mxu1 %v3732_v59 }
 0x756   :  { %2931 = vmatmul.mubr.msk.f32.gmra.mxu1 %vm418_vm2, %v3066_v49  ;;  %2937 = vmatprep.subr.mxu1 %v3743_v61 }
 0x757   :  { %2938 = vmatpush3.msra.mxu1 %v3743_v61 }
 0x758   :  { %2939 = vmatprep.subr.mxu1 %v3750_v62 }
 0x759   :  { %2940 = vmatpush3.msra.mxu1 %v3750_v62 }
 0x75a   :  { %2941 = vmatprep.subr.mxu1 %v3757_v63 }
 0x75b   :  { %2942 = vmatpush3.msra.mxu1 %v3757_v63 }
 0x75c   :  { %2943 = vmatprep.subr.mxu1 %v3764_v1 }
 0x75d   :  { %2944 = vmatpush3.msra.mxu1 %v3764_v1 }
 0x75e   :  { %2945 = vmatprep.subr.mxu1 %v3771_v3 }
 0x75f   :  { %2946 = vmatpush3.msra.mxu1 %v3771_v3 }
 0x760   :  { %2947 = vmatprep.subr.mxu1 %v3778_v4 }
 0x761   :  { %2948 = vmatpush3.msra.mxu1 %v3778_v4 }
 0x80a   :  { %v2879_v26 = vpop.f32.mrf.mxu1 }
 0x80b   :  { %v1734_v25 = vadd.f32 %v2879_v26, %v3345_v48 }
 0x80c   :  { %v1728_v28 = vpop.f32.mrf.mxu1 }
 0x80d   :  { %3067 = vtanh.f32 %v1734_v25  ;;  %v1729_v22 = vadd.f32 %v3345_v48, %v1728_v28 }
 0x80e   :  { %v2882_v27 = vpop.f32.mrf.mxu1 }
 0x80f   :  { %3069 = vtanh.f32 %v1729_v22  ;;  %v1744_v51 = vadd.f32 %v3847_v50, %v2882_v27 }
 0x810   :  { %v1738_v52 = vpop.f32.mrf.mxu1 }
 0x811   :  { %3071 = vtanh.f32 %v1744_v51  ;;  %v1739_v53 = vadd.f32 %v3847_v50, %v1738_v52 }
 0x812   :  { %v2929_v11 = vpop.f32.mrf.mxu1 }
 0x813   :  { %3073 = vtanh.f32 %v1739_v53  ;;  %v2075_v17 = vadd.f32 %v2929_v11, %v382_v15 }
 0x814   :  { %v2055_v12 = vpop.f32.mrf.mxu1 }
 0x815   :  { %v2074_v0 = vadd.f32 %v2055_v12, %v377_v14 }
 0x816   :  { %v2932_v13 = vpop.f32.mrf.mxu1 }
 0x817   :  { %v2077_v38 = vadd.f32 %v2932_v13, %v392_v24 }
 0x818   :  { %v2065_v19 = vpop.f32.mrf.mxu1 }
 0x819   :  { %v2076_v37 = vadd.f32 %v2065_v19, %v387_v23 }
 0x81a   :  { %v3068_v54 = vpop.eup %3067 }
 0x81b   :  { %1862 = vrot.lane.b32.xlu1 %v3068_v54, %s3114_s9 }
 0x81c   :  { %v3070_v55 = vpop.eup %3069 }
 0x81d   :  { %1860 = vrot.lane.b32.xlu0 %v3070_v55, %s3114_s9  ;;  %v2411_v55 = vld [vmem:[%s3929_s7] ss:$0 sm:$0xff] }
 0x81e   :  { %v3072_v48 = vpop.eup %3071 }
 0x81f   :  { %1866 = vrot.lane.b32.xlu1 %v3072_v48, %s3114_s9 }
 0x820   :  { %v3074_v56 = vpop.eup %3073 }
 0x821   :  { %1864 = vrot.lane.b32.xlu0 %v3074_v56, %s3114_s9 }
 0x88d   :  { %v1863_v57 = vpop.permute.xlu1 %1862 }
 0x88e   :  { %v1873_v60 = vsel %vm418_vm2, %v3062_v46, %v1863_v57 }
 0x88f   :  { %v1861_v58 = vpop.permute.xlu0 %1860 }
 0x890   :  { %v1872_v59 = vsel %vm418_vm2, %v3060_v45, %v1861_v58  ;;  %v407_v45 = vld [vmem:[%s3928_s6] sm:$0xff] }
 0x891   :  { %2913 = vmatprep.mubr.msk.f32.mxu0 %vm519_vm3, %v1872_v59  ;;  %v1867_v61 = vpop.permute.xlu1 %1866 }
 0x892   :  { %2914 = vmatmul.mubr.msk.f32.vlgmr.msra.gmra.mxu0 %vm519_vm3, %v1873_v60  ;;  %v1875_v1 = vsel %vm418_vm2, %v3066_v49, %v1867_v61 }
 0x893   :  { %v1865_v62 = vpop.permute.xlu0 %1864  ;;  %2956 = vmatpush3.msra.mxu0 %v410_v31 }
 0x894   :  { %v1874_v63 = vsel %vm418_vm2, %v3064_v47, %v1865_v62  ;;  %2957 = vmatprep.subr.mxu0 %v409_v43 }
 0x895   :  { %2916 = vmatprep.mubr.msk.f32.mxu0 %vm519_vm3, %v1874_v63  ;;  %2958 = vmatpush3.msra.mxu0 %v409_v43 }
 0x896   :  { %2917 = vmatmul.mubr.msk.f32.gmra.mxu0 %vm519_vm3, %v1875_v1  ;;  %2959 = vmatprep.subr.mxu0 %v408_v44 }
 0x897   :  { %2960 = vmatpush3.msra.mxu0 %v408_v44 }
 0x898   :  { %2961 = vmatprep.subr.mxu0 %v407_v45 }
 0x899   :  { %2962 = vmatpush3.msra.mxu0 %v407_v45 }
 0x952   :  { %v2915_v3 = vpop.f32.mrf.mxu0 }
 0x953   :  { %v1960_v4 = vadd.f32 %v3847_v50, %v2915_v3 }
 0x954   :  { %v1954_v5 = vpop.f32.mrf.mxu0 }
 0x955   :  { %3075 = vtanh.f32 %v1960_v4  ;;  %v1955_v20 = vadd.f32 %v3847_v50, %v1954_v5 }
 0x956   :  { %v2918_v21 = vpop.f32.mrf.mxu0 }
 0x957   :  { %3077 = vtanh.f32 %v1955_v20  ;;  %v1970_v7 = vadd.f32 %v3847_v50, %v2918_v21 }
 0x958   :  { %v1964_v9 = vpop.f32.mrf.mxu0 }
 0x959   :  { %3079 = vtanh.f32 %v1970_v7  ;;  %v1965_v18 = vadd.f32 %v3847_v50, %v1964_v9 }
 0x95b   :  { %3081 = vtanh.f32 %v1965_v18 }
 0x95c   :  { %3083 = vtanh.f32 %v2074_v0 }
 0x95d   :  { %3085 = vtanh.f32 %v2075_v17 }
 0x95e   :  { %3087 = vtanh.f32 %v2076_v37 }
 0x95f   :  { %3089 = vtanh.f32 %v2077_v38 }
 0x962   :  { %v3076_v2 = vpop.eup %3075 }
 0x963   :  { %2088 = vrot.lane.b32.xlu1 %v3076_v2, %s3114_s9 }
 0x964   :  { %v3078_v6 = vpop.eup %3077 }
 0x965   :  { %2086 = vrot.lane.b32.xlu0 %v3078_v6, %s3114_s9 }
 0x966   :  { %v3080_v8 = vpop.eup %3079 }
 0x967   :  { %2092 = vrot.lane.b32.xlu1 %v3080_v8, %s3114_s9 }
 0x968   :  { %v3082_v10 = vpop.eup %3081 }
 0x969   :  { %2090 = vrot.lane.b32.xlu0 %v3082_v10, %s3114_s9  ;;  %v3084_v34 = vpop.eup %3083 }
 0x96a   :  { %v3086_v41 = vpop.eup %3085 }
 0x96b   :  { %v3088_v35 = vpop.eup %3087 }
 0x96c   :  { %v3090_v30 = vpop.eup %3089 }
 0x9d5   :  { %v2089_v39 = vpop.permute.xlu1 %2088 }
 0x9d6   :  { %v2099_v42 = vsel %vm418_vm2, %v3086_v41, %v2089_v39 }
 0x9d7   :  { %v2087_v40 = vpop.permute.xlu0 %2086 }
 0x9d8   :  { %v2098_v33 = vsel %vm418_vm2, %v3084_v34, %v2087_v40 }
 0x9d9   :  { %2949 = vmatprep.mubr.msk.f32.mxu1 %vm519_vm3, %v2098_v33  ;;  %v2093_v36 = vpop.permute.xlu1 %2092 }
 0x9da   :  { %2950 = vmatmul.mubr.msk.f32.vlgmr.msra.gmra.mxu1 %vm519_vm3, %v2099_v42  ;;  %v2101_v32 = vsel %vm418_vm2, %v3090_v30, %v2093_v36 }
 0x9db   :  { %v2091_v16 = vpop.permute.xlu0 %2090 }
 0x9dc   :  { %v2100_v29 = vsel %vm418_vm2, %v3088_v35, %v2091_v16 }
 0x9dd   :  { %2952 = vmatprep.mubr.msk.f32.mxu1 %vm519_vm3, %v2100_v29 }
 0x9de   :  { %2953 = vmatmul.mubr.msk.f32.gmra.mxu1 %vm519_vm3, %v2101_v32 }
 0xa9a   :  { %v2951_v46 = vpop.f32.mrf.mxu1 }
 0xa9b   :  { %v2186_v47 = vadd.f32 %v3847_v50, %v2951_v46 }
 0xa9c   :  { %v2180_v49 = vpop.f32.mrf.mxu1 }
 0xa9d   :  { %v2181_v26 = vadd.f32 %v3847_v50, %v2180_v49 }
 0xa9e   :  { %v2954_v25 = vpop.f32.mrf.mxu1 }
 0xa9f   :  { %3091 = vtanh.f32 %v2181_v26  ;;  %v2196_v28 = vadd.f32 %v3847_v50, %v2954_v25 }
 0xaa0   :  { %3093 = vtanh.f32 %v2186_v47  ;;  %v2190_v22 = vpop.f32.mrf.mxu1 }
 0xaa1   :  { %v2191_v27 = vadd.f32 %v3847_v50, %v2190_v22 }
 0xaa3   :  { %3095 = vtanh.f32 %v2191_v27 }
 0xaa4   :  { %3097 = vtanh.f32 %v2196_v28 }
 0xaac   :  { %v3092_v51 = vpop.eup %3091 }
 0xaad   :  { %v3094_v52 = vpop.eup %3093  ;;  %2963 = vmatprep.mubr.msk.f32.mxu0 %vm418_vm2, %v3092_v51 }
 0xaae   :  { %2964 = vmatmul.mubr.msk.f32.vlgmr.msra.gmra.mxu0 %vm418_vm2, %v3094_v52 }
 0xab0   :  { %v3096_v53 = vpop.eup %3095 }
 0xab1   :  { %v3098_v54 = vpop.eup %3097  ;;  %2966 = vmatprep.mubr.msk.f32.mxu0 %vm418_vm2, %v3096_v53 }
 0xab2   :  { %2967 = vmatmul.mubr.msk.f32.gmra.mxu0 %vm418_vm2, %v3098_v54 }
 0xb6e   :  { %v2965_v48 = vpop.f32.mrf.mxu0 }
 0xb6f   :  { %v2294_v50 = vadd.f32 %v2965_v48, %v2411_v55 }
 0xb70   :  { %v2288_v56 = vpop.f32.mrf.mxu0 }
 0xb71   :  { %2309 = vst.msk [vmem:[%s3930_s8 + $0x8] sm:$0xff] %vm2307_vm4, %v2294_v50  ;;  %v2289_v57 = vadd.f32 %v2411_v55, %v2288_v56 }
 0xb72   :  { %v2968_v58 = vpop.f32.mrf.mxu0 }
 0xb73   :  { %2308 = vst.msk [vmem:[%s3930_s8] sm:$0xff] %vm2307_vm4, %v2289_v57  ;;  %v2304_v59 = vadd.f32 %v2968_v58, %v2411_v55 }
 0xb74   :  { %v2298_v60 = vpop.f32.mrf.mxu0 }
 0xb75   :  { %2311 = vst.msk [vmem:[%s3930_s8 + $0x18] sm:$0xff] %vm2307_vm4, %v2304_v59  ;;  %v2299_v61 = vadd.f32 %v2411_v55, %v2298_v60 }
 0xb77   :  { %2310 = vst.msk [vmem:[%s3930_s8 + $0x10] sm:$0xff] %vm2307_vm4, %v2299_v61 }

</bundles_post_ra>
